<compile_context>
chip_gen: v7x
topology: tpu7x:2x2x1
jax: 0.10.0
libtpu: 0.0.40
codegen_flags: <defaults>
</compile_context>

<pallas_src>
import functools

import jax
import jax.numpy as jnp
from jax import lax
from jax.experimental import pallas as pl
from jax.experimental.pallas import tpu as pltpu


def _dwsep_kernel(x_ref, wf_ref, bf_ref, out_ref, xh_ref, *, H, W):
    # x_ref  : (1, Cin, H*W)       input image (NCHW, spatial flattened on lanes)
    # wf_ref : (9, Ct, Cin)        fused dw+pw weights for this Cout tile
    # bf_ref : (Ct, 1)             fused bias (pw @ dw_b + pw_b)
    # out_ref: (1, Ct, H*W)        output tile (spatial flattened on lanes)
    # xh_ref : (Cin, (H+2)*W + 2)  VMEM scratch: vertically padded flat image
    Cin = x_ref.shape[1]
    HW = H * W
    halo = W + 1
    cdt = xh_ref.dtype

    # Zero ONLY the halo; the interior H*W region is overwritten right after.
    xh_ref[:, :halo] = jnp.zeros((Cin, halo), cdt)
    xh_ref[:, halo + HW:] = jnp.zeros((Cin, halo), cdt)
    xh_ref[:, halo:halo + HW] = x_ref[0].astype(cdt)

    # Horizontal pad=1 masks, generated in-kernel (no HBM mask input).
    col = lax.broadcasted_iota(jnp.int32, (1, HW), 1) % W
    mask_l = (col != 0).astype(cdt)      # taps with dx == 0
    mask_r = (col != W - 1).astype(cdt)  # taps with dx == 2

    # 9 accumulated MXU matmuls (K = Cin each), f32 accumulator.
    acc = jnp.zeros((wf_ref.shape[1], HW), jnp.float32)
    for dy in range(3):
        for dx in range(3):
            t = dy * 3 + dx
            start = dy * W + dx
            xs = xh_ref[:, start:start + HW]
            if dx == 0:
                xs = xs * mask_l
            elif dx == 2:
                xs = xs * mask_r
            acc = acc + jnp.dot(wf_ref[t], xs,
                                preferred_element_type=jnp.float32)

    acc = acc + bf_ref[...].astype(jnp.float32)
    out_ref[0] = acc.astype(out_ref.dtype)


def depthwise_separable_conv(x_nchw, dw_w, dw_b, pw_w, pw_b):
    """Forward pass equivalent to the PyTorch DepthwiseSeparableConv module.

    x_nchw: (B, Cin, H, W)
    dw_w  : (Cin, 1, 3, 3)    depthwise.weight
    dw_b  : (Cin,)            depthwise.bias
    pw_w  : (Cout, Cin, 1, 1) pointwise.weight
    pw_b  : (Cout,)           pointwise.bias
    returns (B, Cout, H, W)
    """
    B, Cin, H, W = x_nchw.shape
    Cout = pw_w.shape[0]
    HW = H * W
    PADL = (H + 2) * W + 2

    # MXU compute dtype: keep bf16 operands bf16 (fast path on v6e/v7x), else f32.
    if x_nchw.dtype in (jnp.dtype(jnp.bfloat16), jnp.dtype(jnp.float32)):
        cdt = x_nchw.dtype
    else:
        cdt = jnp.dtype(jnp.float32)

    # Free, contiguous reshape (no transpose, no HBM copy materialized).
    x_flat = x_nchw.reshape(B, Cin, HW).astype(cdt)

    # Fold the depthwise conv into the pointwise conv (exact in real arithmetic,
    # valid because there is no nonlinearity between the two convs):
    wdw = dw_w[:, 0, :, :].astype(jnp.float32)                 # (Cin, 3, 3)
    wpw = pw_w[:, :, 0, 0].astype(jnp.float32)                 # (Cout, Cin)
    wdw_taps = jnp.transpose(wdw, (1, 2, 0)).reshape(9, Cin)   # (tap, cin)
    wfull = (wpw[None, :, :] * wdw_taps[:, None, :]).astype(cdt)   # (9, Cout, Cin)
    bfull = (wpw @ dw_b.astype(jnp.float32)
             + pw_b.astype(jnp.float32)).reshape(Cout, 1)

    # Second parallel grid axis over Cout tiles (megacore balance for small/odd B).
    co_tile = 256 if (Cout > 256 and Cout % 256 == 0) else Cout
    n_co = Cout // co_tile

    kernel = functools.partial(_dwsep_kernel, H=H, W=W)

    # Scoped-VMEM limit: 32 MiB floor is plenty at these shapes (and safe on
    # v7x's 64 MiB); grows with the working set for larger shapes on v5e/v6e.
    elt = jnp.dtype(cdt).itemsize
    est = (2 * Cin * HW * elt                              # double-buffered input
           + 9 * Cout * Cin * elt                          # fused weights
           + 2 * co_tile * HW * x_nchw.dtype.itemsize      # output blocks
           + Cin * PADL * elt                              # halo scratch
           + 3 * co_tile * HW * 4)                         # f32 accumulator + headroom
    vmem_limit = int(min(96 * 2**20, max(32 * 2**20, 4 * est)))

    def _build(single_buffer_consts):
        const_kw = {}
        if single_buffer_consts and hasattr(pl, "Buffered"):
            # Grid-invariant inputs: no need to double-buffer across the grid.
            const_kw = dict(pipeline_mode=pl.Buffered(1))
        grid_spec = pltpu.PrefetchScalarGridSpec(
            num_scalar_prefetch=0,
            grid=(B, n_co),
            in_specs=[
                pl.BlockSpec((1, Cin, HW), lambda b, j: (b, 0, 0)),
                pl.BlockSpec((9, co_tile, Cin), lambda b, j: (0, j, 0), **const_kw),
                pl.BlockSpec((co_tile, 1), lambda b, j: (j, 0), **const_kw),
            ],
            out_specs=pl.BlockSpec((1, co_tile, HW), lambda b, j: (b, j, 0)),
            scratch_shapes=[pltpu.VMEM((Cin, PADL), cdt)],  # halo buffer
        )
        return pl.pallas_call(
            kernel,
            out_shape=jax.ShapeDtypeStruct((B, Cout, HW), x_nchw.dtype),
            grid_spec=grid_spec,
            compiler_params=pltpu.CompilerParams(
                dimension_semantics=("parallel", "parallel"),
                vmem_limit_bytes=vmem_limit,
            ),
        )

    try:
        out = _build(True)(x_flat, wfull, bfull)
    except Exception:
        # JAX version without single-buffer pipeline_mode support -> default pipelining.
        out = _build(False)(x_flat, wfull, bfull)

    # Free, contiguous reshape back to NCHW (no transpose needed).
    return out.reshape(B, Cout, H, W)


def _reference(x_nchw, dw_w, dw_b, pw_w, pw_b):
    """Pure-JAX NCHW reference mirroring nn.Conv2d semantics."""
    Cin = x_nchw.shape[1]
    dn = lax.conv_dimension_numbers(x_nchw.shape, dw_w.shape, ("NCHW", "OIHW", "NCHW"))
    y = lax.conv_general_dilated(x_nchw, dw_w, (1, 1), ((1, 1), (1, 1)),
                                 dimension_numbers=dn, feature_group_count=Cin)
    y = y + dw_b.reshape(1, -1, 1, 1)
    dn2 = lax.conv_dimension_numbers(y.shape, pw_w.shape, ("NCHW", "OIHW", "NCHW"))
    z = lax.conv_general_dilated(y, pw_w, (1, 1), ((0, 0), (0, 0)),
                                 dimension_numbers=dn2)
    return z + pw_b.reshape(1, -1, 1, 1)


if __name__ == "__main__":
    B, Cin, Cout, H, W = 2, 4, 8, 16, 16

    key = jax.random.PRNGKey(0)
    k1, k2, k3, k4, k5 = jax.random.split(key, 5)
    x = jax.random.normal(k1, (B, Cin, H, W), jnp.float32)
    dw_w = 0.1 * jax.random.normal(k2, (Cin, 1, 3, 3), jnp.float32)
    dw_b = 0.1 * jax.random.normal(k3, (Cin,), jnp.float32)
    pw_w = 0.1 * jax.random.normal(k4, (Cout, Cin, 1, 1), jnp.float32)
    pw_b = 0.1 * jax.random.normal(k5, (Cout,), jnp.float32)

    out = depthwise_separable_conv(x, dw_w, dw_b, pw_w, pw_b)
    out = jax.block_until_ready(out)

    ref = _reference(x, dw_w, dw_b, pw_w, pw_b)
    assert out.shape == (B, Cout, H, W)
    assert jnp.max(jnp.abs(out - ref)) < 1e-4, "mismatch vs reference"

    print("KERNEL_OK")
</pallas_src>

<mosaic_0001>
module attributes {stable_mosaic.version = 11 : i64} {
  func.func @_dwsep_kernel(%arg0: i32, %arg1: i32, %arg2: memref<1x4x256xf32, #tpu.memory_space<vmem>>, %arg3: memref<9x8x4xf32, #tpu.memory_space<vmem>>, %arg4: memref<8x1xf32, #tpu.memory_space<vmem>>, %arg5: memref<1x8x256xf32, #tpu.memory_space<vmem>>, %arg6: memref<4x290xf32, #tpu.memory_space<vmem>>) attributes {dimension_semantics = [#tpu.dimension_semantics<parallel>, #tpu.dimension_semantics<parallel>], iteration_bounds = array<i64: 2, 1>, scalar_prefetch = 0 : i64, scratch_operands = 1 : i64, tpu.core_type = #tpu.core_type<tc>, window_params = [{transform_indices = @transform_0, window_bounds = array<i64: 1, 4, 256>}, {pipeline_mode = #tpu.pipeline_mode<synchronous>, transform_indices = @transform_1, window_bounds = array<i64: 9, 8, 4>}, {pipeline_mode = #tpu.pipeline_mode<synchronous>, transform_indices = @transform_2, window_bounds = array<i64: 8, 1>}, {transform_indices = @transform_3, window_bounds = array<i64: 1, 8, 256>}]} {
    %cst = arith.constant 0.000000e+00 : f32
    %0 = vector.broadcast %cst : f32 to vector<4x17xf32>
    %c0 = arith.constant 0 : index
    %c0_0 = arith.constant 0 : index
    %1 = vector.load %arg6[%c0, %c0_0] : memref<4x290xf32, #tpu.memory_space<vmem>>, vector<4x17xf32>
    tpu.vector_store %arg6[%c0, %c0_0], %0 {strides = array<i32>} : memref<4x290xf32, #tpu.memory_space<vmem>>, vector<4x17xf32>,
    %cst_1 = arith.constant 0.000000e+00 : f32
    %2 = vector.broadcast %cst_1 : f32 to vector<4x17xf32>
    %c0_2 = arith.constant 0 : index
    %c273 = arith.constant 273 : index
    %3 = vector.load %arg6[%c0_2, %c273] : memref<4x290xf32, #tpu.memory_space<vmem>>, vector<4x17xf32>
    tpu.vector_store %arg6[%c0_2, %c273], %2 {strides = array<i32>} : memref<4x290xf32, #tpu.memory_space<vmem>>, vector<4x17xf32>,
    %c0_3 = arith.constant 0 : index
    %c0_4 = arith.constant 0 : index
    %c0_5 = arith.constant 0 : index
    %4 = vector.load %arg2[%c0_3, %c0_4, %c0_5] : memref<1x4x256xf32, #tpu.memory_space<vmem>>, vector<1x4x256xf32>
    %5 = vector.shape_cast %4 : vector<1x4x256xf32> to vector<4x256xf32>
    %c0_6 = arith.constant 0 : index
    %c17 = arith.constant 17 : index
    %6 = vector.load %arg6[%c0_6, %c17] : memref<4x290xf32, #tpu.memory_space<vmem>>, vector<4x256xf32>
    tpu.vector_store %arg6[%c0_6, %c17], %5 {strides = array<i32>} : memref<4x290xf32, #tpu.memory_space<vmem>>, vector<4x256xf32>,
    %7 = tpu.iota {dimensions = array<i32: 1>} : vector<1x256xi32>
    %c16_i32 = arith.constant 16 : i32
    %c0_i32 = arith.constant 0 : i32
    %8 = arith.cmpi eq, %c16_i32, %c0_i32 : i32
    %c1_i32 = arith.constant 1 : i32
    %9 = arith.select %8, %c1_i32, %c16_i32 : i32
    %10 = vector.broadcast %9 : i32 to vector<1x256xi32>
    %11 = arith.remsi %7, %10 : vector<1x256xi32>
    %c0_i32_7 = arith.constant 0 : i32
    %12 = vector.broadcast %c0_i32_7 : i32 to vector<1x256xi32>
    %13 = arith.cmpi ne, %11, %12 : vector<1x256xi32>
    %c0_i32_8 = arith.constant 0 : i32
    %14 = vector.broadcast %c0_i32_8 : i32 to vector<1x256xi32>
    %15 = arith.cmpi slt, %11, %14 : vector<1x256xi32>
    %c0_i32_9 = arith.constant 0 : i32
    %16 = arith.cmpi slt, %9, %c0_i32_9 : i32
    %17 = vector.broadcast %16 : i1 to vector<1x256xi1>
    %18 = vector.broadcast %17 : vector<1x256xi1> to vector<1x256xi1>
    %19 = arith.xori %15, %18 : vector<1x256xi1>
    %20 = arith.andi %19, %13 : vector<1x256xi1>
    %21 = vector.broadcast %9 : i32 to vector<1x256xi32>
    %22 = arith.addi %11, %21 : vector<1x256xi32>
    %23 = arith.select %20, %22, %11 : vector<1x256xi1>, vector<1x256xi32>
    %c0_i32_10 = arith.constant 0 : i32
    %24 = vector.broadcast %c0_i32_10 : i32 to vector<1x256xi32>
    %25 = arith.cmpi ne, %23, %24 : vector<1x256xi32>
    %26 = arith.extui %25 : vector<1x256xi1> to vector<1x256xi32>
    %27 = arith.sitofp %26 : vector<1x256xi32> to vector<1x256xf32>
    %c15_i32 = arith.constant 15 : i32
    %28 = vector.broadcast %c15_i32 : i32 to vector<1x256xi32>
    %29 = arith.cmpi ne, %23, %28 : vector<1x256xi32>
    %30 = arith.extui %29 : vector<1x256xi1> to vector<1x256xi32>
    %31 = arith.sitofp %30 : vector<1x256xi32> to vector<1x256xf32>
    %cst_11 = arith.constant 0.000000e+00 : f32
    %32 = vector.broadcast %cst_11 : f32 to vector<8x256xf32>
    %c0_12 = arith.constant 0 : index
    %c0_13 = arith.constant 0 : index
    %33 = vector.load %arg6[%c0_12, %c0_13] : memref<4x290xf32, #tpu.memory_space<vmem>>, vector<4x256xf32>
    %34 = vector.broadcast %27 : vector<1x256xf32> to vector<4x256xf32>
    %35 = arith.mulf %33, %34 : vector<4x256xf32>
    %c0_14 = arith.constant 0 : index
    %c0_15 = arith.constant 0 : index
    %c0_16 = arith.constant 0 : index
    %36 = vector.load %arg3[%c0_14, %c0_15, %c0_16] : memref<9x8x4xf32, #tpu.memory_space<vmem>>, vector<1x8x4xf32>
    %37 = vector.shape_cast %36 : vector<1x8x4xf32> to vector<8x4xf32>
    %cst_17 = arith.constant dense<0.000000e+00> : vector<8x256xf32>
    %38 = tpu.matmul %37, %35, %cst_17 {dimension_numbers = #tpu.dot_dimension_numbers<[1], [0], [0], [1], [0, 0, 1, 1], [], []>} : vector<8x4xf32>, vector<4x256xf32>, vector<8x256xf32> -> vector<8x256xf32>
    %39 = arith.addf %32, %38 : vector<8x256xf32>
    %c0_18 = arith.constant 0 : index
    %c1 = arith.constant 1 : index
    %40 = vector.load %arg6[%c0_18, %c1] : memref<4x290xf32, #tpu.memory_space<vmem>>, vector<4x256xf32>
    %c1_19 = arith.constant 1 : index
    %c0_20 = arith.constant 0 : index
    %c0_21 = arith.constant 0 : index
    %41 = vector.load %arg3[%c1_19, %c0_20, %c0_21] : memref<9x8x4xf32, #tpu.memory_space<vmem>>, vector<1x8x4xf32>
    %42 = vector.shape_cast %41 : vector<1x8x4xf32> to vector<8x4xf32>
    %cst_22 = arith.constant dense<0.000000e+00> : vector<8x256xf32>
    %43 = tpu.matmul %42, %40, %cst_22 {dimension_numbers = #tpu.dot_dimension_numbers<[1], [0], [0], [1], [0, 0, 1, 1], [], []>} : vector<8x4xf32>, vector<4x256xf32>, vector<8x256xf32> -> vector<8x256xf32>
    %44 = arith.addf %39, %43 : vector<8x256xf32>
    %c0_23 = arith.constant 0 : index
    %c2 = arith.constant 2 : index
    %45 = vector.load %arg6[%c0_23, %c2] : memref<4x290xf32, #tpu.memory_space<vmem>>, vector<4x256xf32>
    %46 = vector.broadcast %31 : vector<1x256xf32> to vector<4x256xf32>
    %47 = arith.mulf %45, %46 : vector<4x256xf32>
    %c2_24 = arith.constant 2 : index
    %c0_25 = arith.constant 0 : index
    %c0_26 = arith.constant 0 : index
    %48 = vector.load %arg3[%c2_24, %c0_25, %c0_26] : memref<9x8x4xf32, #tpu.memory_space<vmem>>, vector<1x8x4xf32>
    %49 = vector.shape_cast %48 : vector<1x8x4xf32> to vector<8x4xf32>
    %cst_27 = arith.constant dense<0.000000e+00> : vector<8x256xf32>
    %50 = tpu.matmul %49, %47, %cst_27 {dimension_numbers = #tpu.dot_dimension_numbers<[1], [0], [0], [1], [0, 0, 1, 1], [], []>} : vector<8x4xf32>, vector<4x256xf32>, vector<8x256xf32> -> vector<8x256xf32>
    %51 = arith.addf %44, %50 : vector<8x256xf32>
    %c0_28 = arith.constant 0 : index
    %c16 = arith.constant 16 : index
    %52 = vector.load %arg6[%c0_28, %c16] : memref<4x290xf32, #tpu.memory_space<vmem>>, vector<4x256xf32>
    %53 = vector.broadcast %27 : vector<1x256xf32> to vector<4x256xf32>
    %54 = arith.mulf %52, %53 : vector<4x256xf32>
    %c3 = arith.constant 3 : index
    %c0_29 = arith.constant 0 : index
    %c0_30 = arith.constant 0 : index
    %55 = vector.load %arg3[%c3, %c0_29, %c0_30] : memref<9x8x4xf32, #tpu.memory_space<vmem>>, vector<1x8x4xf32>
    %56 = vector.shape_cast %55 : vector<1x8x4xf32> to vector<8x4xf32>
    %cst_31 = arith.constant dense<0.000000e+00> : vector<8x256xf32>
    %57 = tpu.matmul %56, %54, %cst_31 {dimension_numbers = #tpu.dot_dimension_numbers<[1], [0], [0], [1], [0, 0, 1, 1], [], []>} : vector<8x4xf32>, vector<4x256xf32>, vector<8x256xf32> -> vector<8x256xf32>
    %58 = arith.addf %51, %57 : vector<8x256xf32>
    %c0_32 = arith.constant 0 : index
    %c17_33 = arith.constant 17 : index
    %59 = vector.load %arg6[%c0_32, %c17_33] : memref<4x290xf32, #tpu.memory_space<vmem>>, vector<4x256xf32>
    %c4 = arith.constant 4 : index
    %c0_34 = arith.constant 0 : index
    %c0_35 = arith.constant 0 : index
    %60 = vector.load %arg3[%c4, %c0_34, %c0_35] : memref<9x8x4xf32, #tpu.memory_space<vmem>>, vector<1x8x4xf32>
    %61 = vector.shape_cast %60 : vector<1x8x4xf32> to vector<8x4xf32>
    %cst_36 = arith.constant dense<0.000000e+00> : vector<8x256xf32>
    %62 = tpu.matmul %61, %59, %cst_36 {dimension_numbers = #tpu.dot_dimension_numbers<[1], [0], [0], [1], [0, 0, 1, 1], [], []>} : vector<8x4xf32>, vector<4x256xf32>, vector<8x256xf32> -> vector<8x256xf32>
    %63 = arith.addf %58, %62 : vector<8x256xf32>
    %c0_37 = arith.constant 0 : index
    %c18 = arith.constant 18 : index
    %64 = vector.load %arg6[%c0_37, %c18] : memref<4x290xf32, #tpu.memory_space<vmem>>, vector<4x256xf32>
    %65 = vector.broadcast %31 : vector<1x256xf32> to vector<4x256xf32>
    %66 = arith.mulf %64, %65 : vector<4x256xf32>
    %c5 = arith.constant 5 : index
    %c0_38 = arith.constant 0 : index
    %c0_39 = arith.constant 0 : index
    %67 = vector.load %arg3[%c5, %c0_38, %c0_39] : memref<9x8x4xf32, #tpu.memory_space<vmem>>, vector<1x8x4xf32>
    %68 = vector.shape_cast %67 : vector<1x8x4xf32> to vector<8x4xf32>
    %cst_40 = arith.constant dense<0.000000e+00> : vector<8x256xf32>
    %69 = tpu.matmul %68, %66, %cst_40 {dimension_numbers = #tpu.dot_dimension_numbers<[1], [0], [0], [1], [0, 0, 1, 1], [], []>} : vector<8x4xf32>, vector<4x256xf32>, vector<8x256xf32> -> vector<8x256xf32>
    %70 = arith.addf %63, %69 : vector<8x256xf32>
    %c0_41 = arith.constant 0 : index
    %c32 = arith.constant 32 : index
    %71 = vector.load %arg6[%c0_41, %c32] : memref<4x290xf32, #tpu.memory_space<vmem>>, vector<4x256xf32>
    %72 = vector.broadcast %27 : vector<1x256xf32> to vector<4x256xf32>
    %73 = arith.mulf %71, %72 : vector<4x256xf32>
    %c6 = arith.constant 6 : index
    %c0_42 = arith.constant 0 : index
    %c0_43 = arith.constant 0 : index
    %74 = vector.load %arg3[%c6, %c0_42, %c0_43] : memref<9x8x4xf32, #tpu.memory_space<vmem>>, vector<1x8x4xf32>
    %75 = vector.shape_cast %74 : vector<1x8x4xf32> to vector<8x4xf32>
    %cst_44 = arith.constant dense<0.000000e+00> : vector<8x256xf32>
    %76 = tpu.matmul %75, %73, %cst_44 {dimension_numbers = #tpu.dot_dimension_numbers<[1], [0], [0], [1], [0, 0, 1, 1], [], []>} : vector<8x4xf32>, vector<4x256xf32>, vector<8x256xf32> -> vector<8x256xf32>
    %77 = arith.addf %70, %76 : vector<8x256xf32>
    %c0_45 = arith.constant 0 : index
    %c33 = arith.constant 33 : index
    %78 = vector.load %arg6[%c0_45, %c33] : memref<4x290xf32, #tpu.memory_space<vmem>>, vector<4x256xf32>
    %c7 = arith.constant 7 : index
    %c0_46 = arith.constant 0 : index
    %c0_47 = arith.constant 0 : index
    %79 = vector.load %arg3[%c7, %c0_46, %c0_47] : memref<9x8x4xf32, #tpu.memory_space<vmem>>, vector<1x8x4xf32>
    %80 = vector.shape_cast %79 : vector<1x8x4xf32> to vector<8x4xf32>
    %cst_48 = arith.constant dense<0.000000e+00> : vector<8x256xf32>
    %81 = tpu.matmul %80, %78, %cst_48 {dimension_numbers = #tpu.dot_dimension_numbers<[1], [0], [0], [1], [0, 0, 1, 1], [], []>} : vector<8x4xf32>, vector<4x256xf32>, vector<8x256xf32> -> vector<8x256xf32>
    %82 = arith.addf %77, %81 : vector<8x256xf32>
    %c0_49 = arith.constant 0 : index
    %c34 = arith.constant 34 : index
    %83 = vector.load %arg6[%c0_49, %c34] : memref<4x290xf32, #tpu.memory_space<vmem>>, vector<4x256xf32>
    %84 = vector.broadcast %31 : vector<1x256xf32> to vector<4x256xf32>
    %85 = arith.mulf %83, %84 : vector<4x256xf32>
    %c8 = arith.constant 8 : index
    %c0_50 = arith.constant 0 : index
    %c0_51 = arith.constant 0 : index
    %86 = vector.load %arg3[%c8, %c0_50, %c0_51] : memref<9x8x4xf32, #tpu.memory_space<vmem>>, vector<1x8x4xf32>
    %87 = vector.shape_cast %86 : vector<1x8x4xf32> to vector<8x4xf32>
    %cst_52 = arith.constant dense<0.000000e+00> : vector<8x256xf32>
    %88 = tpu.matmul %87, %85, %cst_52 {dimension_numbers = #tpu.dot_dimension_numbers<[1], [0], [0], [1], [0, 0, 1, 1], [], []>} : vector<8x4xf32>, vector<4x256xf32>, vector<8x256xf32> -> vector<8x256xf32>
    %89 = arith.addf %82, %88 : vector<8x256xf32>
    %c0_53 = arith.constant 0 : index
    %c0_54 = arith.constant 0 : index
    %90 = vector.load %arg4[%c0_53, %c0_54] : memref<8x1xf32, #tpu.memory_space<vmem>>, vector<8x1xf32>
    %91 = vector.broadcast %90 : vector<8x1xf32> to vector<8x256xf32>
    %92 = arith.addf %89, %91 : vector<8x256xf32>
    %c0_55 = arith.constant 0 : index
    %c0_56 = arith.constant 0 : index
    %c0_57 = arith.constant 0 : index
    %93 = vector.load %arg5[%c0_55, %c0_56, %c0_57] : memref<1x8x256xf32, #tpu.memory_space<vmem>>, vector<1x8x256xf32>
    %94 = vector.shape_cast %93 : vector<1x8x256xf32> to vector<8x256xf32>
    %95 = vector.shape_cast %92 : vector<8x256xf32> to vector<1x8x256xf32>
    tpu.vector_store %arg5[%c0_55, %c0_56, %c0_57], %95 {strides = array<i32>} : memref<1x8x256xf32, #tpu.memory_space<vmem>>, vector<1x8x256xf32>,
    return
  }
  func.func @transform_0(%arg0: i32, %arg1: i32) -> (i32, i32, i32) {
    %c0_i32 = arith.constant 0 : i32
    %c0_i32_0 = arith.constant 0 : i32
    %c0_i32_1 = arith.constant 0 : i32
    return %arg0, %c0_i32, %c0_i32_0 : i32, i32, i32
  }
  func.func @transform_1(%arg0: i32, %arg1: i32) -> (i32, i32, i32) {
    %c0_i32 = arith.constant 0 : i32
    %c0_i32_0 = arith.constant 0 : i32
    %c0_i32_1 = arith.constant 0 : i32
    return %c0_i32, %arg1, %c0_i32_0 : i32, i32, i32
  }
  func.func @transform_2(%arg0: i32, %arg1: i32) -> (i32, i32) {
    %c0_i32 = arith.constant 0 : i32
    %c0_i32_0 = arith.constant 0 : i32
    return %arg1, %c0_i32 : i32, i32
  }
  func.func @transform_3(%arg0: i32, %arg1: i32) -> (i32, i32, i32) {
    %c0_i32 = arith.constant 0 : i32
    %c0_i32_0 = arith.constant 0 : i32
    return %arg0, %arg1, %c0_i32 : i32, i32, i32
  }
}

module attributes {stable_mosaic.version = 11 : i64} {
  func.func @_dwsep_kernel(%arg0: i32, %arg1: i32, %arg2: memref<1x4x256xf32, #tpu.memory_space<vmem>>, %arg3: memref<9x8x4xf32, #tpu.memory_space<vmem>>, %arg4: memref<8x1xf32, #tpu.memory_space<vmem>>, %arg5: memref<1x8x256xf32, #tpu.memory_space<vmem>>, %arg6: memref<4x290xf32, #tpu.memory_space<vmem>>) attributes {dimension_semantics = [#tpu.dimension_semantics<parallel>, #tpu.dimension_semantics<parallel>], iteration_bounds = array<i64: 2, 1>, scalar_prefetch = 0 : i64, scratch_operands = 1 : i64, tpu.core_type = #tpu.core_type<tc>, window_params = [{transform_indices = @transform_0, window_bounds = array<i64: 1, 4, 256>}, {transform_indices = @transform_1, window_bounds = array<i64: 9, 8, 4>}, {transform_indices = @transform_2, window_bounds = array<i64: 8, 1>}, {transform_indices = @transform_3, window_bounds = array<i64: 1, 8, 256>}]} {
    %cst = arith.constant 0.000000e+00 : f32
    %0 = vector.broadcast %cst : f32 to vector<4x17xf32>
    %c0 = arith.constant 0 : index
    %c0_0 = arith.constant 0 : index
    %1 = vector.load %arg6[%c0, %c0_0] : memref<4x290xf32, #tpu.memory_space<vmem>>, vector<4x17xf32>
    tpu.vector_store %arg6[%c0, %c0_0], %0 {strides = array<i32>} : memref<4x290xf32, #tpu.memory_space<vmem>>, vector<4x17xf32>,
    %cst_1 = arith.constant 0.000000e+00 : f32
    %2 = vector.broadcast %cst_1 : f32 to vector<4x17xf32>
    %c0_2 = arith.constant 0 : index
    %c273 = arith.constant 273 : index
    %3 = vector.load %arg6[%c0_2, %c273] : memref<4x290xf32, #tpu.memory_space<vmem>>, vector<4x17xf32>
    tpu.vector_store %arg6[%c0_2, %c273], %2 {strides = array<i32>} : memref<4x290xf32, #tpu.memory_space<vmem>>, vector<4x17xf32>,
    %c0_3 = arith.constant 0 : index
    %c0_4 = arith.constant 0 : index
    %c0_5 = arith.constant 0 : index
    %4 = vector.load %arg2[%c0_3, %c0_4, %c0_5] : memref<1x4x256xf32, #tpu.memory_space<vmem>>, vector<1x4x256xf32>
    %5 = vector.shape_cast %4 : vector<1x4x256xf32> to vector<4x256xf32>
    %c0_6 = arith.constant 0 : index
    %c17 = arith.constant 17 : index
    %6 = vector.load %arg6[%c0_6, %c17] : memref<4x290xf32, #tpu.memory_space<vmem>>, vector<4x256xf32>
    tpu.vector_store %arg6[%c0_6, %c17], %5 {strides = array<i32>} : memref<4x290xf32, #tpu.memory_space<vmem>>, vector<4x256xf32>,
    %7 = tpu.iota {dimensions = array<i32: 1>} : vector<1x256xi32>
    %c16_i32 = arith.constant 16 : i32
    %c0_i32 = arith.constant 0 : i32
    %8 = arith.cmpi eq, %c16_i32, %c0_i32 : i32
    %c1_i32 = arith.constant 1 : i32
    %9 = arith.select %8, %c1_i32, %c16_i32 : i32
    %10 = vector.broadcast %9 : i32 to vector<1x256xi32>
    %11 = arith.remsi %7, %10 : vector<1x256xi32>
    %c0_i32_7 = arith.constant 0 : i32
    %12 = vector.broadcast %c0_i32_7 : i32 to vector<1x256xi32>
    %13 = arith.cmpi ne, %11, %12 : vector<1x256xi32>
    %c0_i32_8 = arith.constant 0 : i32
    %14 = vector.broadcast %c0_i32_8 : i32 to vector<1x256xi32>
    %15 = arith.cmpi slt, %11, %14 : vector<1x256xi32>
    %c0_i32_9 = arith.constant 0 : i32
    %16 = arith.cmpi slt, %9, %c0_i32_9 : i32
    %17 = vector.broadcast %16 : i1 to vector<1x256xi1>
    %18 = vector.broadcast %17 : vector<1x256xi1> to vector<1x256xi1>
    %19 = arith.xori %15, %18 : vector<1x256xi1>
    %20 = arith.andi %19, %13 : vector<1x256xi1>
    %21 = vector.broadcast %9 : i32 to vector<1x256xi32>
    %22 = arith.addi %11, %21 : vector<1x256xi32>
    %23 = arith.select %20, %22, %11 : vector<1x256xi1>, vector<1x256xi32>
    %c0_i32_10 = arith.constant 0 : i32
    %24 = vector.broadcast %c0_i32_10 : i32 to vector<1x256xi32>
    %25 = arith.cmpi ne, %23, %24 : vector<1x256xi32>
    %26 = arith.extui %25 : vector<1x256xi1> to vector<1x256xi32>
    %27 = arith.sitofp %26 : vector<1x256xi32> to vector<1x256xf32>
    %c15_i32 = arith.constant 15 : i32
    %28 = vector.broadcast %c15_i32 : i32 to vector<1x256xi32>
    %29 = arith.cmpi ne, %23, %28 : vector<1x256xi32>
    %30 = arith.extui %29 : vector<1x256xi1> to vector<1x256xi32>
    %31 = arith.sitofp %30 : vector<1x256xi32> to vector<1x256xf32>
    %cst_11 = arith.constant 0.000000e+00 : f32
    %32 = vector.broadcast %cst_11 : f32 to vector<8x256xf32>
    %c0_12 = arith.constant 0 : index
    %c0_13 = arith.constant 0 : index
    %33 = vector.load %arg6[%c0_12, %c0_13] : memref<4x290xf32, #tpu.memory_space<vmem>>, vector<4x256xf32>
    %34 = vector.broadcast %27 : vector<1x256xf32> to vector<4x256xf32>
    %35 = arith.mulf %33, %34 : vector<4x256xf32>
    %c0_14 = arith.constant 0 : index
    %c0_15 = arith.constant 0 : index
    %c0_16 = arith.constant 0 : index
    %36 = vector.load %arg3[%c0_14, %c0_15, %c0_16] : memref<9x8x4xf32, #tpu.memory_space<vmem>>, vector<1x8x4xf32>
    %37 = vector.shape_cast %36 : vector<1x8x4xf32> to vector<8x4xf32>
    %cst_17 = arith.constant dense<0.000000e+00> : vector<8x256xf32>
    %38 = tpu.matmul %37, %35, %cst_17 {dimension_numbers = #tpu.dot_dimension_numbers<[1], [0], [0], [1], [0, 0, 1, 1], [], []>} : vector<8x4xf32>, vector<4x256xf32>, vector<8x256xf32> -> vector<8x256xf32>
    %39 = arith.addf %32, %38 : vector<8x256xf32>
    %c0_18 = arith.constant 0 : index
    %c1 = arith.constant 1 : index
    %40 = vector.load %arg6[%c0_18, %c1] : memref<4x290xf32, #tpu.memory_space<vmem>>, vector<4x256xf32>
    %c1_19 = arith.constant 1 : index
    %c0_20 = arith.constant 0 : index
    %c0_21 = arith.constant 0 : index
    %41 = vector.load %arg3[%c1_19, %c0_20, %c0_21] : memref<9x8x4xf32, #tpu.memory_space<vmem>>, vector<1x8x4xf32>
    %42 = vector.shape_cast %41 : vector<1x8x4xf32> to vector<8x4xf32>
    %cst_22 = arith.constant dense<0.000000e+00> : vector<8x256xf32>
    %43 = tpu.matmul %42, %40, %cst_22 {dimension_numbers = #tpu.dot_dimension_numbers<[1], [0], [0], [1], [0, 0, 1, 1], [], []>} : vector<8x4xf32>, vector<4x256xf32>, vector<8x256xf32> -> vector<8x256xf32>
    %44 = arith.addf %39, %43 : vector<8x256xf32>
    %c0_23 = arith.constant 0 : index
    %c2 = arith.constant 2 : index
    %45 = vector.load %arg6[%c0_23, %c2] : memref<4x290xf32, #tpu.memory_space<vmem>>, vector<4x256xf32>
    %46 = vector.broadcast %31 : vector<1x256xf32> to vector<4x256xf32>
    %47 = arith.mulf %45, %46 : vector<4x256xf32>
    %c2_24 = arith.constant 2 : index
    %c0_25 = arith.constant 0 : index
    %c0_26 = arith.constant 0 : index
    %48 = vector.load %arg3[%c2_24, %c0_25, %c0_26] : memref<9x8x4xf32, #tpu.memory_space<vmem>>, vector<1x8x4xf32>
    %49 = vector.shape_cast %48 : vector<1x8x4xf32> to vector<8x4xf32>
    %cst_27 = arith.constant dense<0.000000e+00> : vector<8x256xf32>
    %50 = tpu.matmul %49, %47, %cst_27 {dimension_numbers = #tpu.dot_dimension_numbers<[1], [0], [0], [1], [0, 0, 1, 1], [], []>} : vector<8x4xf32>, vector<4x256xf32>, vector<8x256xf32> -> vector<8x256xf32>
    %51 = arith.addf %44, %50 : vector<8x256xf32>
    %c0_28 = arith.constant 0 : index
    %c16 = arith.constant 16 : index
    %52 = vector.load %arg6[%c0_28, %c16] : memref<4x290xf32, #tpu.memory_space<vmem>>, vector<4x256xf32>
    %53 = vector.broadcast %27 : vector<1x256xf32> to vector<4x256xf32>
    %54 = arith.mulf %52, %53 : vector<4x256xf32>
    %c3 = arith.constant 3 : index
    %c0_29 = arith.constant 0 : index
    %c0_30 = arith.constant 0 : index
    %55 = vector.load %arg3[%c3, %c0_29, %c0_30] : memref<9x8x4xf32, #tpu.memory_space<vmem>>, vector<1x8x4xf32>
    %56 = vector.shape_cast %55 : vector<1x8x4xf32> to vector<8x4xf32>
    %cst_31 = arith.constant dense<0.000000e+00> : vector<8x256xf32>
    %57 = tpu.matmul %56, %54, %cst_31 {dimension_numbers = #tpu.dot_dimension_numbers<[1], [0], [0], [1], [0, 0, 1, 1], [], []>} : vector<8x4xf32>, vector<4x256xf32>, vector<8x256xf32> -> vector<8x256xf32>
    %58 = arith.addf %51, %57 : vector<8x256xf32>
    %c0_32 = arith.constant 0 : index
    %c17_33 = arith.constant 17 : index
    %59 = vector.load %arg6[%c0_32, %c17_33] : memref<4x290xf32, #tpu.memory_space<vmem>>, vector<4x256xf32>
    %c4 = arith.constant 4 : index
    %c0_34 = arith.constant 0 : index
    %c0_35 = arith.constant 0 : index
    %60 = vector.load %arg3[%c4, %c0_34, %c0_35] : memref<9x8x4xf32, #tpu.memory_space<vmem>>, vector<1x8x4xf32>
    %61 = vector.shape_cast %60 : vector<1x8x4xf32> to vector<8x4xf32>
    %cst_36 = arith.constant dense<0.000000e+00> : vector<8x256xf32>
    %62 = tpu.matmul %61, %59, %cst_36 {dimension_numbers = #tpu.dot_dimension_numbers<[1], [0], [0], [1], [0, 0, 1, 1], [], []>} : vector<8x4xf32>, vector<4x256xf32>, vector<8x256xf32> -> vector<8x256xf32>
    %63 = arith.addf %58, %62 : vector<8x256xf32>
    %c0_37 = arith.constant 0 : index
    %c18 = arith.constant 18 : index
    %64 = vector.load %arg6[%c0_37, %c18] : memref<4x290xf32, #tpu.memory_space<vmem>>, vector<4x256xf32>
    %65 = vector.broadcast %31 : vector<1x256xf32> to vector<4x256xf32>
    %66 = arith.mulf %64, %65 : vector<4x256xf32>
    %c5 = arith.constant 5 : index
    %c0_38 = arith.constant 0 : index
    %c0_39 = arith.constant 0 : index
    %67 = vector.load %arg3[%c5, %c0_38, %c0_39] : memref<9x8x4xf32, #tpu.memory_space<vmem>>, vector<1x8x4xf32>
    %68 = vector.shape_cast %67 : vector<1x8x4xf32> to vector<8x4xf32>
    %cst_40 = arith.constant dense<0.000000e+00> : vector<8x256xf32>
    %69 = tpu.matmul %68, %66, %cst_40 {dimension_numbers = #tpu.dot_dimension_numbers<[1], [0], [0], [1], [0, 0, 1, 1], [], []>} : vector<8x4xf32>, vector<4x256xf32>, vector<8x256xf32> -> vector<8x256xf32>
    %70 = arith.addf %63, %69 : vector<8x256xf32>
    %c0_41 = arith.constant 0 : index
    %c32 = arith.constant 32 : index
    %71 = vector.load %arg6[%c0_41, %c32] : memref<4x290xf32, #tpu.memory_space<vmem>>, vector<4x256xf32>
    %72 = vector.broadcast %27 : vector<1x256xf32> to vector<4x256xf32>
    %73 = arith.mulf %71, %72 : vector<4x256xf32>
    %c6 = arith.constant 6 : index
    %c0_42 = arith.constant 0 : index
    %c0_43 = arith.constant 0 : index
    %74 = vector.load %arg3[%c6, %c0_42, %c0_43] : memref<9x8x4xf32, #tpu.memory_space<vmem>>, vector<1x8x4xf32>
    %75 = vector.shape_cast %74 : vector<1x8x4xf32> to vector<8x4xf32>
    %cst_44 = arith.constant dense<0.000000e+00> : vector<8x256xf32>
    %76 = tpu.matmul %75, %73, %cst_44 {dimension_numbers = #tpu.dot_dimension_numbers<[1], [0], [0], [1], [0, 0, 1, 1], [], []>} : vector<8x4xf32>, vector<4x256xf32>, vector<8x256xf32> -> vector<8x256xf32>
    %77 = arith.addf %70, %76 : vector<8x256xf32>
    %c0_45 = arith.constant 0 : index
    %c33 = arith.constant 33 : index
    %78 = vector.load %arg6[%c0_45, %c33] : memref<4x290xf32, #tpu.memory_space<vmem>>, vector<4x256xf32>
    %c7 = arith.constant 7 : index
    %c0_46 = arith.constant 0 : index
    %c0_47 = arith.constant 0 : index
    %79 = vector.load %arg3[%c7, %c0_46, %c0_47] : memref<9x8x4xf32, #tpu.memory_space<vmem>>, vector<1x8x4xf32>
    %80 = vector.shape_cast %79 : vector<1x8x4xf32> to vector<8x4xf32>
    %cst_48 = arith.constant dense<0.000000e+00> : vector<8x256xf32>
    %81 = tpu.matmul %80, %78, %cst_48 {dimension_numbers = #tpu.dot_dimension_numbers<[1], [0], [0], [1], [0, 0, 1, 1], [], []>} : vector<8x4xf32>, vector<4x256xf32>, vector<8x256xf32> -> vector<8x256xf32>
    %82 = arith.addf %77, %81 : vector<8x256xf32>
    %c0_49 = arith.constant 0 : index
    %c34 = arith.constant 34 : index
    %83 = vector.load %arg6[%c0_49, %c34] : memref<4x290xf32, #tpu.memory_space<vmem>>, vector<4x256xf32>
    %84 = vector.broadcast %31 : vector<1x256xf32> to vector<4x256xf32>
    %85 = arith.mulf %83, %84 : vector<4x256xf32>
    %c8 = arith.constant 8 : index
    %c0_50 = arith.constant 0 : index
    %c0_51 = arith.constant 0 : index
    %86 = vector.load %arg3[%c8, %c0_50, %c0_51] : memref<9x8x4xf32, #tpu.memory_space<vmem>>, vector<1x8x4xf32>
    %87 = vector.shape_cast %86 : vector<1x8x4xf32> to vector<8x4xf32>
    %cst_52 = arith.constant dense<0.000000e+00> : vector<8x256xf32>
    %88 = tpu.matmul %87, %85, %cst_52 {dimension_numbers = #tpu.dot_dimension_numbers<[1], [0], [0], [1], [0, 0, 1, 1], [], []>} : vector<8x4xf32>, vector<4x256xf32>, vector<8x256xf32> -> vector<8x256xf32>
    %89 = arith.addf %82, %88 : vector<8x256xf32>
    %c0_53 = arith.constant 0 : index
    %c0_54 = arith.constant 0 : index
    %90 = vector.load %arg4[%c0_53, %c0_54] : memref<8x1xf32, #tpu.memory_space<vmem>>, vector<8x1xf32>
    %91 = vector.broadcast %90 : vector<8x1xf32> to vector<8x256xf32>
    %92 = arith.addf %89, %91 : vector<8x256xf32>
    %c0_55 = arith.constant 0 : index
    %c0_56 = arith.constant 0 : index
    %c0_57 = arith.constant 0 : index
    %93 = vector.load %arg5[%c0_55, %c0_56, %c0_57] : memref<1x8x256xf32, #tpu.memory_space<vmem>>, vector<1x8x256xf32>
    %94 = vector.shape_cast %93 : vector<1x8x256xf32> to vector<8x256xf32>
    %95 = vector.shape_cast %92 : vector<8x256xf32> to vector<1x8x256xf32>
    tpu.vector_store %arg5[%c0_55, %c0_56, %c0_57], %95 {strides = array<i32>} : memref<1x8x256xf32, #tpu.memory_space<vmem>>, vector<1x8x256xf32>,
    return
  }
  func.func @transform_0(%arg0: i32, %arg1: i32) -> (i32, i32, i32) {
    %c0_i32 = arith.constant 0 : i32
    %c0_i32_0 = arith.constant 0 : i32
    %c0_i32_1 = arith.constant 0 : i32
    return %arg0, %c0_i32, %c0_i32_0 : i32, i32, i32
  }
  func.func @transform_1(%arg0: i32, %arg1: i32) -> (i32, i32, i32) {
    %c0_i32 = arith.constant 0 : i32
    %c0_i32_0 = arith.constant 0 : i32
    %c0_i32_1 = arith.constant 0 : i32
    return %c0_i32, %arg1, %c0_i32_0 : i32, i32, i32
  }
  func.func @transform_2(%arg0: i32, %arg1: i32) -> (i32, i32) {
    %c0_i32 = arith.constant 0 : i32
    %c0_i32_0 = arith.constant 0 : i32
    return %arg1, %c0_i32 : i32, i32
  }
  func.func @transform_3(%arg0: i32, %arg1: i32) -> (i32, i32, i32) {
    %c0_i32 = arith.constant 0 : i32
    %c0_i32_0 = arith.constant 0 : i32
    return %arg0, %arg1, %c0_i32 : i32, i32, i32
  }
}

</mosaic_0001>

<bundles_post_ra>
// kernel: tpu_custom_call.1
= control target key start
LH: loop header
LB: loop body
LE: loop exit
PB: predicated region body
PF: predicated region fallthrough
CT: control target
= control target key end

     0   :  { %8 = vsyncpa [#allocation4], 0  ;;  %s1771_s0 = inlined_call_operand.vmem [shape: f32[2,4,256], index: 0, kind: input, shape index: {}]   ;;  %s1772_s1 = inlined_call_operand.vmem [shape: f32[9,8,4], index: 1, kind: input, shape index: {}]   ;;  %s1773_s2 = inlined_call_operand.vmem [shape: f32[8,1], index: 2, kind: input, shape index: {}]   ;;  %s1774_s3 = inlined_call_operand.hbm [shape: f32[2,8,256], index: 3, kind: output, shape index: {}]  }
   0x1   :  { %10 = vsyncpa [#allocation4 + $0x1], 0  ;;  %s1565_s12 = smov 0   ;;  %s1567_s13 = smov 0  }
   0x2   :  { %s1569_s14 = smov 0   ;;  %s1571_s15 = smov 0  }
   0x3   :  { %s1573_s16 = smov 0   ;;  %s1575_s17 = smov 0  }
   0x4 LB: > { %s1303_s18 = sadd.s32 4294967295, %s1526_s17   ;;  %s1304_s19 = sadd.s32 4294967294, %s1526_s17   ;;  %s1526_s17 = sphi %s1575_s17, %s16_s17   ;;  %s1522_s16 = sphi %s1573_s16, %s1781_s16   ;;  %s1518_s15 = sphi %s1571_s15, %s1780_s15   ;;  %s1514_s14 = sphi %s1569_s14, %s1779_s14   ;;  %s1510_s13 = sphi %s1567_s13, %s1778_s13   ;;  %s1506_s12 = sphi %s1565_s12, %s1777_s12  }
   0x5   : > { %s28_s20 = sadd.s32 1, %s1522_s16  ;;  %s115_s21 = sadd.s32 1, %s1514_s14 }
   0x6   : > { %p30_p0 = scmp.ge.s32.totalorder %s28_s20, 2  ;;  %p125_p1 = scmp.ne.s32.totalorder %s1514_s14, %s1510_s13 }
   0x7   : > { %p126_p2 = scmp.eq.s32.totalorder %s1303_s18, 1  ;;  %p131_p3 = scmp.ne.s32.totalorder %s1510_s13, %s1506_s12 }
   0x8   : > { %s1783_s20 = smov (%p30_p0, %s28_s20), 0  ;;  %p132_p5 = scmp.eq.s32.totalorder %s1304_s19, 1 }
   0x9   : > { %p1605_p4 = por %p126_p2, %p125_p1  ;;  %s110_s23 = ssub.s32 %s1522_s16, %s1783_s20 }
   0xa   : > { %p1309_p6 = scmp.ge.s32.totalorder %s1526_s17, 1  ;;  %p113_p7 = scmp.eq.s32.totalorder %s110_s23, 0 }
   0xb   : > { %p1612_p8 = por %p132_p5, %p131_p3  ;;  %p172_p9 = scmp.lt.s32.totalorder %s1526_s17, 3 }
   0xc   : > { %s1618_s25 = scalar_select %p113_p7, %s1514_s14, %s115_s21  }
   0xd   : > { %p173_p10 = pnand %p1309_p6, %p172_p9 }
   0xe   : > { %p204_p11 = scmp.lt.s32.totalorder (!%p173_p10), %s1518_s15, 1  ;;  %v235_v0 = vlaneseq (!%p173_p10)  ;;  %vm217_vm0 = vcmask (!%p173_p10), 134144   ;;  %vm219_vm1 = vcmask (!%p173_p10), 273544   ;;  %v1528_v1 = vmov (!%p173_p10), 0.0   ;;  %s1529_s4 = smov (!%p173_p10), 17   ;;  %v1176_v57 = vld [vmem:[%s1773_s2] sm:$0xff] (!%p173_p10) }
   0xf   : > { %176 = sbr.rel (%p173_p10) target bundleno = 545 (0x221), region = 32  ;;  %218 = vst.msk [vmem:[#allocation2] sm:$0xf] (!%p173_p10), %vm217_vm0, %v1528_v1  ;;  %369 = vmatprep.mubr.f32.mxu1 (!%p173_p10), %v1528_v1  ;;  %756 = vmatprep.mubr.f32.mxu0 (!%p173_p10), %v1528_v1  ;;  %s1530_s5 = smov (!%p173_p10), 32   ;;  %vm230_vm6 = vcmask (!%p173_p10), 1043592   ;;  %vm231_vm7 = vcmask (!%p173_p10), 1047556  }
  0x10   : > { %220 = vst.msk [vmem:[#allocation2 + $0x8] sm:$0xf] (!%p173_p10), %vm219_vm1, %v1528_v1  ;;  %v236_v2 = vand.u32 (!%p173_p10), 127, %v235_v0  ;;  %s1531_s6 = smov (!%p173_p10), 18   ;;  %s1532_s7 = smov (!%p173_p10), 2   ;;  %vm226_vm8 = vcmask (!%p173_p10), 138240   ;;  %vm232_vm9 = vmor (!%p173_p10), %vm231_vm7, %vm230_vm6 }
  0x11   : > { %s1533_s8 = smov (!%p173_p10), 16   ;;  %s1534_s9 = smov (!%p173_p10), 34   ;;  %vm875_vm10 = vcmask (!%p173_p10), 261120   ;;  %vm770_vm11 = vcmask (!%p173_p10), 146432   ;;  %vm464_vm12 = vcmask (!%p173_p10), 15360   ;;  %vm569_vm13 = vcmask (!%p173_p10), 130048  }
  0x12   : > { %v237_v3 = vadd.s32 (!%p173_p10), 128, %v236_v2  ;;  %v242_v4 = vand.u32 (!%p173_p10), 15, %v236_v2  ;;  %s1535_s10 = smov (!%p173_p10), 111   ;;  %s1536_s11 = smov (!%p173_p10), 127   ;;  %vm1076_vm14 = vcmask (!%p173_p10), 277504   ;;  %v1541_v53 = vmov (!%p173_p10), 0  }
  0x13   : > { %s1537_s18 = smov (!%p173_p10), 96   ;;  %s1538_s19 = smov (!%p173_p10), 110   ;;  %1446 = vset.pattern.permute.xlu0 (!%p173_p10), %v1541_v53  ;;  %vm293_vm15 = vcmask (!%p173_p10), 1039360   ;;  %vm682_vm1 = vcmask (!%p173_p10), 908288   ;;  %vm481_vm6 = vcmask (!%p173_p10), 1031168   ;;  %vm586_vm7 = vcmask (!%p173_p10), 916480  }
  0x14   : > { %v249_v6 = vand.u32 (!%p173_p10), 15, %v237_v3  ;;  %vm262_vm2 = vcmp.ne.s32.totalorder (!%p173_p10), %v242_v4, 0  ;;  %vm268_vm3 = vcmp.ne.s32.totalorder (!%p173_p10), %v242_v4, 15  ;;  %s1539_s21 = smov (!%p173_p10), 126   ;;  %s1540_s23 = smov (!%p173_p10), 95  }
  0x15   : > { %v1313_v7 = vsel (!%p173_p10), %vm262_vm2, 1.0, %v1528_v1  ;;  %v1315_v8 = vsel (!%p173_p10), %vm268_vm3, 1.0, %v1528_v1  ;;  %vm296_vm2 = vcmask (!%p173_p10), 31744   ;;  %vm787_vm3 = vcmask (!%p173_p10), 900096  }
  0x16   : > { %s205_s26 = scalar_select %p204_p11, %s1518_s15, 1  ;;  %vm263_vm4 = vcmp.ne.s32.totalorder %v249_v6, 0  ;;  %vm269_vm5 = vcmp.ne.s32.totalorder %v249_v6, 15 }
  0x17   : > { %v1314_v9 = vsel %vm263_vm4, 1.0, %v1528_v1  ;;  %v1316_v10 = vsel %vm269_vm5, 1.0, %v1528_v1  ;;  %vm892_vm4 = vcmask 785408   ;;  %vm988_vm5 = vcmask 777216  }
  0x18   : > { %s1357_s27 = sshll.u32 %s205_s26, 3  ;;  %v1634_v11 = vcombine.low %v1313_v7, %v1314_v9  ;;  %v460_v12 = vcombine.low %v1315_v8, %v1316_v10  ;;  %s1542_s26 = smov 112   ;;  %v1317_v7 = vld [vmem:[%s1772_s1 + $0x8] sm:$0xff]  ;;  %v1332_v8 = vld [vmem:[%s1772_s1 + $0x20] sm:$0xff] }
  0x19   : > { %s208_s30 = scalar_lea.vmem %s1771_s0, %s1357_s27  ;;  %s1543_s27 = smov 94  }
  0x1a   : > { %v221_v5 = vld [vmem:[%s208_s30] sm:$0xff]  ;;  %872 = vrot.lane.b32.xlu1 %v1634_v11, %s1530_s5 }
  0x1b   : > { %223 = vrot.lane.b32.xlu0 %v221_v5, %s1529_s4  ;;  %s201_s4 = sand.u32 1, %s1510_s13  }
  0x1c   : > { %s1310_s5 = sshll.u32 %s201_s4, 4 }
  0x1e   : > { %461 = vrot.lane.b32.xlu1 %v460_v12, %s1532_s7  ;;  %s203_s7 = scalar_lea.vmem [#allocation3], %s1310_s5 }
  0x1f   : > { %767 = vrot.lane.b32.xlu0 %v460_v12, %s1531_s6  ;;  %s1358_s6 = sshll.u32 %s1518_s15, 8  ;;  %s1544_s15 = smov [#allocation3]  }
  0x22   : > { %1073 = vrot.lane.b32.xlu1 %v460_v12, %s1534_s9 }
  0x23   : > { %566 = vrot.lane.b32.xlu0 %v1634_v11, %s1533_s8  ;;  %s1203_s8 = sshll.u32 %s203_s7, 4  ;;  %s1726_s8 = int_to_ptr.vmem [resolvable:$true] %s1203_s8 }
  0x8c   : > { %v873_v18 = vpop.permute.xlu1 %872 }
  0x8d   : > { %v224_v13 = vpop.permute.xlu0 %223  ;;  %v874_v21 = vrot.slane %v873_v18, 4 }
  0x8e   : > { %v225_v14 = vrot.slane %v224_v13, 4 }
  0x8f   : > { %v876_v24 = vsel %vm875_vm10, %v874_v21, %v873_v18 }
  0x90   : > { %v227_v15 = vsel %vm226_vm8, %v225_v14, %v224_v13  ;;  %234 = vst.msk [vmem:[#allocation2 + $0x8] sm:$0xf] %vm217_vm0, %v225_v14  ;;  %v462_v30 = vpop.permute.xlu1 %461  ;;  %vm300_vm0 = vcmask 1043456   ;;  %v280_v14 = vld [vmem:[%s1772_s1] sm:$0xff]  ;;  %vm1093_vm8 = vcmask 769024  }
  0x91   : > { %233 = vst.msk [vmem:[#allocation2] sm:$0xff] %vm232_vm9, %v227_v15  ;;  %v768_v19 = vpop.permute.xlu0 %767  ;;  %v463_v32 = vrot.slane %v462_v30, 4 }
  0x92   : > { %v769_v22 = vrot.slane %v768_v19, 4 }
  0x93   : > { %v465_v39 = vsel %vm464_vm12, %v463_v32, %v462_v30 }
  0x94   : > { %v771_v25 = vsel %vm770_vm11, %v769_v22, %v768_v19  ;;  %v1074_v41 = vpop.permute.xlu1 %1073 }
  0x95   : > { %v567_v37 = vpop.permute.xlu0 %566  ;;  %v1075_v45 = vrot.slane %v1074_v41, 4 }
  0x96   : > { %v568_v40 = vrot.slane %v567_v37, 4 }
  0x97   : > { %v670_v16 = vld [vmem:[#allocation2 + $0x8] sm:$0xf]  ;;  %v1077_v49 = vsel %vm1076_vm14, %v1075_v45, %v1074_v41 }
  0x98   : > { %v281_v17 = vld [vmem:[#allocation2 + $0x8] sm:$0xf]  ;;  %680 = vrot.lane.b32.xlu1 %v670_v16, %s1535_s10  ;;  %v1639_v20 = vld [vmem:[#allocation2] sm:$0xff]  ;;  %v570_v44 = vsel %vm569_vm13, %v568_v40, %v567_v37 }
  0x99   : > { %291 = vrot.lane.b32.xlu0 %v281_v17, %s1536_s11  ;;  %v675_v23 = vcombine.high %v1639_v20, %v1639_v20  ;;  %v766_v26 = vld [vmem:[#allocation2 + $0x8] sm:$0xf]  ;;  %v879_v27 = vmul.f32 %v876_v24, %v1639_v20  ;;  %v774_v28 = vmul.f32 %v1639_v20, %v771_v25  ;;  %v468_v42 = vmul.f32 %v1639_v20, %v465_v39 }
  0x9a   : > { %v775_v29 = vmul.f32 %v769_v22, %v766_v26  ;;  %v871_v31 = vld [vmem:[#allocation2 + $0x8] sm:$0xf]  ;;  %v573_v47 = vmul.f32 %v1639_v20, %v570_v44  ;;  %v1080_v51 = vmul.f32 %v1077_v49, %v1639_v20  ;;  %v279_v62 = vmul.f32 %v1639_v20, %v1634_v11  ;;  %v1340_v26 = vld [vmem:[%s1772_s1 + $0x30] sm:$0xff]  ;;  %v1348_v44 = vld [vmem:[%s1772_s1 + $0x40] sm:$0xff] }
  0x9b   : > { %v780_v33 = vcombine.high %v774_v28, %v774_v28  ;;  %v880_v34 = vmul.f32 %v874_v21, %v871_v31  ;;  %v457_v35 = vld [vmem:[#allocation2 + $0x8] sm:$0xf]  ;;  %v885_v38 = vcombine.high %v879_v27, %v879_v27  ;;  %v474_v48 = vcombine.high %v468_v42, %v468_v42 }
  0x9c   : > { %287 = vrot.lane.b32.xlu1 %v1639_v20, %s1536_s11  ;;  %v469_v36 = vmul.f32 %v463_v32, %v457_v35  ;;  %v976_v43 = vld [vmem:[#allocation2 + $0x8] sm:$0xf]  ;;  %v579_v52 = vcombine.high %v573_v47, %v573_v47  ;;  %v1086_v56 = vcombine.high %v1080_v51, %v1080_v51  ;;  %v377_v4 = vcombine.high %v279_v62, %v279_v62  ;;  %v1324_v32 = vld [vmem:[%s1772_s1 + $0x10] sm:$0xff]  ;;  %v1344_v35 = vld [vmem:[%s1772_s1 + $0x38] sm:$0xff] }
  0x9d   : > { %676 = vrot.lane.b32.xlu0 %v1639_v20, %s1535_s10  ;;  %v565_v46 = vld [vmem:[#allocation2 + $0x8] sm:$0xf] }
  0x9e   : > { %v574_v50 = vmul.f32 %v568_v40, %v565_v46  ;;  %v1072_v54 = vld [vmem:[#allocation2 + $0x8] sm:$0xf] }
  0x9f   : > { %v1081_v55 = vmul.f32 %v1075_v45, %v1072_v54  ;;  %v1336_v17 = vld [vmem:[%s1772_s1 + $0x28] sm:$0xff] }
  0xa0   : > { %289 = vrot.lane.b32.xlu1 %v675_v23, %s1536_s11  ;;  %s1724_s11 = scalar_lea.hbm %s1774_s3, %s1358_s6 }
  0xa1   : > { %678 = vrot.lane.b32.xlu0 %v675_v23, %s1535_s10 }
  0xa4   : > { %886 = vrot.lane.b32.xlu1 %v879_v27, %s1537_s18 }
  0xa5   : > { %785 = vrot.lane.b32.xlu0 %v775_v29, %s1538_s19 }
  0xa8   : > { %783 = vrot.lane.b32.xlu1 %v780_v33, %s1538_s19 }
  0xa9   : > { %890 = vrot.lane.b32.xlu0 %v880_v34, %s1537_s18 }
  0xac   : > { %479 = vrot.lane.b32.xlu1 %v469_v36, %s1539_s21 }
  0xad   : > { %781 = vrot.lane.b32.xlu0 %v774_v28, %s1538_s19  ;;  %s1448_s19 = scalar_lea.vmem %s1726_s8, 256 }
  0xae   : > { %p1449_p12 = scmp.ne.s32.totalorder %s1726_s8, %s1448_s19 }
  0xb0   : > { %888 = vrot.lane.b32.xlu1 %v885_v38, %s1537_s18  ;;  %s1187_s18 = scalar_lea.sflag [#allocation4], %s201_s4  ;;  %p1450_p13 = pnand %p1449_p12, %p1605_p4 }
  0xb1   : > { %984 = vrot.lane.b32.xlu0 %v675_v23, %s1540_s23 }
  0xb2   : > { %p1451_p0 = pneg %p1450_p13 }
  0xb4   : > { %986 = vrot.lane.b32.xlu1 %v976_v43, %s1540_s23  ;;  %v1328_v43 = vld [vmem:[%s1772_s1 + $0x18] sm:$0xff] }
  0xb5   : > { %475 = vrot.lane.b32.xlu0 %v468_v42, %s1539_s21 }
  0xb8   : > { %982 = vrot.lane.b32.xlu1 %v1639_v20, %s1540_s23 }
  0xb9   : > { %477 = vrot.lane.b32.xlu0 %v474_v48, %s1539_s21  ;;  %s1452_s21 = sshll.u32 %s1544_s15, 4  ;;  %s1453_s21 = int_to_ptr.vmem [resolvable:$false] %s1452_s21 }
  0xba   : > { %s1454_s23 = scalar_lea.vmem %s1453_s21, 512  ;;  %p1455_p1 = scmp.lt.s32.totalorder %s1726_s8, %s1453_s21 }
  0xbb   : > { %p1456_p2 = scmp.lt.s32.totalorder %s1454_s23, %s1448_s19 }
  0xbc   : > { %584 = vrot.lane.b32.xlu1 %v574_v50, %s1542_s26 }
  0xbd   : > { %582 = vrot.lane.b32.xlu0 %v579_v52, %s1542_s26  ;;  %p1457_p3 = por %p1456_p2, %p1455_p1 }
  0xbf   : > { %p1458_p5 = pnand %p1457_p3, %p1451_p0 }
  0xc0   : > { %1091 = vrot.lane.b32.xlu1 %v1081_v55, %s1543_s27 }
  0xc1   : > { %1089 = vrot.lane.b32.xlu0 %v1086_v56, %s1543_s27 }
  0xc4   : > { %1087 = vrot.lane.b32.xlu1 %v1080_v51, %s1543_s27 }
  0xc5   : > { %580 = vrot.lane.b32.xlu0 %v573_v47, %s1542_s26 }
  0xc9   : > { %1179 = vperm.xlu0 %1446, %v1176_v57  }
 0x10a   : > { %v681_v58 = vpop.permute.xlu1 %680 }
 0x10b   : > { %v292_v59 = vpop.permute.xlu0 %291 }
 0x10e   : > { %v288_v60 = vpop.permute.xlu1 %287 }
 0x10f   : > { %v677_v61 = vpop.permute.xlu0 %676 }
 0x112   : > { %v290_v63 = vpop.permute.xlu1 %289 }
 0x113   : > { %v679_v0 = vpop.permute.xlu0 %678  ;;  %v295_v2 = vsel %vm293_vm15, %v290_v63, %v292_v59  ;;  %v294_v3 = vsel %vm293_vm15, %v288_v60, %v290_v63 }
 0x114   : > { %1318 = vmatprep.subr.msk.mxu1 %vm300_vm0, %v295_v2  ;;  %v684_v5 = vsel %vm682_vm1, %v679_v0, %v681_v58  ;;  %v683_v6 = vsel %vm682_vm1, %v677_v61, %v679_v0 }
 0x115   : > { %1333 = vmatprep.subr.msk.mxu0 %vm300_vm0, %v684_v5  ;;  %1319 = vmatpush1.msk.msra.mxu1 %vm300_vm0, %v294_v3 }
 0x116   : > { %1334 = vmatpush1.msk.msra.mxu0 %vm300_vm0, %v683_v6  ;;  %v887_v9 = vpop.permute.xlu1 %886  ;;  %1321 = vmatprep.subr.msk.mxu1 %vm300_vm0, %v377_v4 }
 0x117   : > { %v786_v10 = vpop.permute.xlu0 %785  ;;  %1320 = vmatmul.mubr.msk.f32.vlgmr.msra.gmra.mrb[0].mxu1 %vm296_vm2, %v1317_v7  ;;  %1335 = vmatmul.mubr.msk.f32.vlgmr.msra.gmra.mrb[0].mxu0 %vm296_vm2, %v1332_v8 }
 0x118   : > { %1322 = vmatpush1.msk.msra.mxu1 %vm300_vm0, %v279_v62  ;;  %861 = vmatprep.mubr.f32.mxu0 %v1528_v1 }
 0x119   : > { %449 = vmatprep.mubr.f32.mxu1 %v1528_v1 }
 0x11a   : > { %v784_v11 = vpop.permute.xlu1 %783 }
 0x11b   : > { %v789_v12 = vsel %vm787_vm3, %v784_v11, %v786_v10  ;;  %v891_v13 = vpop.permute.xlu0 %890 }
 0x11c   : > { %1337 = vmatprep.subr.msk.mxu0 %vm300_vm0, %v789_v12 }
 0x11e   : > { %v480_v15 = vpop.permute.xlu1 %479 }
 0x11f   : > { %v782_v16 = vpop.permute.xlu0 %781  ;;  %1323 = vmatmul.mubr.msk.f32.vlgmr.msra.gmra.mrb[0].mxu1 %vm296_vm2, %v280_v14 }
 0x120   : > { %v788_v18 = vsel %vm787_vm3, %v782_v16, %v784_v11  ;;  %555 = vmatprep.mubr.f32.mxu1 %v1528_v1 }
 0x121   : > { %1338 = vmatpush1.msk.msra.mxu0 %vm300_vm0, %v788_v18 }
 0x122   : > { %1339 = vmatmul.mubr.msk.f32.vlgmr.msra.gmra.mrb[0].mxu0 %vm296_vm2, %v1336_v17  ;;  %v889_v19 = vpop.permute.xlu1 %888 }
 0x123   : > { %v893_v20 = vsel %vm892_vm4, %v887_v9, %v889_v19  ;;  %v894_v21 = vsel %vm892_vm4, %v889_v19, %v891_v13  ;;  %v985_v22 = vpop.permute.xlu0 %984  ;;  %966 = vmatprep.mubr.f32.mxu0 %v1528_v1 }
 0x124   : > { %1341 = vmatprep.subr.msk.mxu0 %vm300_vm0, %v894_v21 }
 0x125   : > { %1342 = vmatpush1.msk.msra.mxu0 %vm300_vm0, %v893_v20 }
 0x126   : > { %v987_v23 = vpop.permute.xlu1 %986 }
 0x127   : > { %v990_v24 = vsel %vm988_vm5, %v985_v22, %v987_v23  ;;  %v476_v25 = vpop.permute.xlu0 %475 }
 0x128   : > { %1345 = vmatprep.subr.msk.mxu0 %vm300_vm0, %v990_v24 }
 0x12a   : > { %1343 = vmatmul.mubr.msk.f32.vlgmr.msra.gmra.mrb[0].mxu0 %vm296_vm2, %v1340_v26  ;;  %v983_v27 = vpop.permute.xlu1 %982 }
 0x12b   : > { %v989_v28 = vsel %vm988_vm5, %v983_v27, %v985_v22  ;;  %v478_v29 = vpop.permute.xlu0 %477  ;;  %1062 = vmatprep.mubr.f32.mxu0 %v1528_v1 }
 0x12c   : > { %v482_v30 = vsel %vm481_vm6, %v476_v25, %v478_v29  ;;  %v483_v31 = vsel %vm481_vm6, %v478_v29, %v480_v15  ;;  %1346 = vmatpush1.msk.msra.mxu0 %vm300_vm0, %v989_v28 }
 0x12d   : > { %1325 = vmatprep.subr.msk.mxu1 %vm300_vm0, %v483_v31 }
 0x12e   : > { %1326 = vmatpush1.msk.msra.mxu1 %vm300_vm0, %v482_v30  ;;  %v585_v33 = vpop.permute.xlu1 %584 }
 0x12f   : > { %v583_v34 = vpop.permute.xlu0 %582  ;;  %1327 = vmatmul.mubr.msk.f32.vlgmr.msra.gmra.mrb[0].mxu1 %vm296_vm2, %v1324_v32 }
 0x130   : > { %v588_v36 = vsel %vm586_vm7, %v583_v34, %v585_v33  ;;  %660 = vmatprep.mubr.f32.mxu1 %v1528_v1 }
 0x131   : > { %1329 = vmatprep.subr.msk.mxu1 %vm300_vm0, %v588_v36 }
 0x132   : > { %1347 = vmatmul.mubr.msk.f32.vlgmr.msra.gmra.mrb[0].mxu0 %vm296_vm2, %v1344_v35  ;;  %v1092_v37 = vpop.permute.xlu1 %1091 }
 0x133   : > { %v1090_v38 = vpop.permute.xlu0 %1089  ;;  %1167 = vmatprep.mubr.f32.mxu0 %v1528_v1 }
 0x134   : > { %v1095_v39 = vsel %vm1093_vm8, %v1090_v38, %v1092_v37 }
 0x135   : > { %1349 = vmatprep.subr.msk.mxu0 %vm300_vm0, %v1095_v39 }
 0x136   : > { %v1088_v40 = vpop.permute.xlu1 %1087 }
 0x137   : > { %v1094_v41 = vsel %vm1093_vm8, %v1088_v40, %v1090_v38  ;;  %v581_v42 = vpop.permute.xlu0 %580 }
 0x138   : > { %v587_v45 = vsel %vm586_vm7, %v581_v42, %v583_v34  ;;  %1350 = vmatpush1.msk.msra.mxu0 %vm300_vm0, %v1094_v41 }
 0x139   : > { %1330 = vmatpush1.msk.msra.mxu1 %vm300_vm0, %v587_v45 }
 0x13a   : > { %1331 = vmatmul.mubr.msk.f32.vlgmr.msra.gmra.mrb[0].mxu1 %vm296_vm2, %v1328_v43  ;;  %1351 = vmatmul.mubr.msk.f32.vlgmr.msra.gmra.mrb[0].mxu0 %vm296_vm2, %v1348_v44 }
 0x148   : > { %v1180_v1 = vpop.permute.xlu0 %1179 }
 0x20d   : > { %v662_v46 = vpop.f32.mrb[0].mxu1  ;;  %v1169_v47 = vpop.f32.mrb[0].mxu0 }
 0x20e   : > { %v1359_v48 = vadd.f32 %v1169_v47, %v662_v46  ;;  %v664_v49 = vpop.f32.mrb[1].mxu1  ;;  %v1171_v50 = vpop.f32.mrb[1].mxu0 }
 0x20f   : > { %v1360_v51 = vadd.f32 %v1171_v50, %v664_v49 }
 0x210   : > { %v1182_v52 = vadd.f32 %v1359_v48, %v1180_v1 }
 0x211   : > { %v1183_v53 = vadd.f32 %v1360_v51, %v1180_v1 }
 0x212   : > { %1184 = vst [vmem:[%s203_s7] sm:$0xff] %v1182_v52 }
 0x213   : > { %1185 = vst [vmem:[%s203_s7 + $0x8] sm:$0xff] %v1183_v53 }
 0x214   : > { %1461 = shalt.err (!%p1458_p5)
}
 0x215   : > { %s1462_s26 = scalar_lea.hbm %s1724_s11, 256  ;;  %s1466_s29 = scalar_lea.hbm %s1774_s3, 512 }
 0x216   : > { %p1463_p6 = scmp.ne.s32.totalorder %s1724_s11, %s1462_s26  ;;  %p1467_p10 = scmp.lt.u32.totalorder %s1724_s11, %s1774_s3 }
 0x217   : > { %p1468_p11 = scmp.lt.u32.totalorder %s1466_s29, %s1462_s26  ;;  %p1470_p13 = scmp.lt.u32.totalorder %s1462_s26, %s1724_s11 }
 0x218   : > { %p1464_p7 = pnand %p1463_p6, %p1605_p4 }
 0x219   : > { %p1469_p12 = por %p1468_p11, %p1467_p10 }
 0x21a   : > { %p1465_p9 = pneg %p1464_p7 }
 0x21b   : > { %p1471_p0 = por %p1470_p13, %p1469_p12 }
 0x21d   : > { %p1472_p1 = pnand %p1471_p0, %p1465_p9 }
 0x21f   : > { %1475 = shalt.err (!%p1472_p1)
}
 0x220   : > { %1375 = dma.vmem_to_hbm [thread:$0]  (%p1605_p4), %s1726_s8, 256, %s1724_s11, %s1187_s18  }
 0x221 PF: > { %p1381_p2 = scmp.ge.s32.totalorder %s1526_s17, 2  ;;  %s1215_s5 = sand.u32 1, %s1506_s12  }
 0x222   : > { %s1216_s6 = scalar_lea.sflag [#allocation4], %s1215_s5 }
 0x223   : > { %p1378_p3 = pnand %p1381_p2, %p1612_p8 }
 0x225   : > { %1501 = dma.done.wait (!%p1378_p3), %s1216_s6, 256  }
 0x226   : > { %1503 = vsyncadd (!%p1378_p3), %s1216_s6, 4294967040  ;;  %s16_s17 = sadd.s32 1, %s1526_s17   ;;  %s1777_s12 = smov %s1510_s13 }
 0x227   : > { %p13_p5 = scmp.ge.s32.totalorder %s16_s17, 4   ;;  %s1778_s13 = smov %s1514_s14 }
 0x228   : > { %s1779_s14 = smov %s1618_s25  ;;  %s1780_s15 = smov %s1522_s16 }
 0x229   : > { %s1781_s16 = smov %s1783_s20  ;;  %15 = sbr.rel (!%p13_p5) target bundleno = 4 (0x4), region = 81 }
 0x230   :  { %1221 = vsyncpa [#allocation4], 1 }
 0x231   :  { %1223 = vsyncpa [#allocation4 + $0x1], 1 }

// kernel: tpu_custom_call.1
= control target key start
LH: loop header
LB: loop body
LE: loop exit
PB: predicated region body
PF: predicated region fallthrough
CT: control target
= control target key end

     0   :  { %8 = vsyncpa [#allocation4], 0  ;;  %s1771_s0 = inlined_call_operand.vmem [shape: f32[2,4,256], index: 0, kind: input, shape index: {}]   ;;  %s1772_s1 = inlined_call_operand.vmem [shape: f32[9,8,4], index: 1, kind: input, shape index: {}]   ;;  %s1773_s2 = inlined_call_operand.vmem [shape: f32[8,1], index: 2, kind: input, shape index: {}]   ;;  %s1774_s3 = inlined_call_operand.hbm [shape: f32[2,8,256], index: 3, kind: output, shape index: {}]  }
   0x1   :  { %10 = vsyncpa [#allocation4 + $0x1], 0  ;;  %s1565_s12 = smov 0   ;;  %s1567_s13 = smov 0  }
   0x2   :  { %s1569_s14 = smov 0   ;;  %s1571_s15 = smov 0  }
   0x3   :  { %s1573_s16 = smov 0   ;;  %s1575_s17 = smov 0  }
   0x4 LB: > { %s1303_s18 = sadd.s32 4294967295, %s1526_s17   ;;  %s1304_s19 = sadd.s32 4294967294, %s1526_s17   ;;  %s1526_s17 = sphi %s1575_s17, %s16_s17   ;;  %s1522_s16 = sphi %s1573_s16, %s1781_s16   ;;  %s1518_s15 = sphi %s1571_s15, %s1780_s15   ;;  %s1514_s14 = sphi %s1569_s14, %s1779_s14   ;;  %s1510_s13 = sphi %s1567_s13, %s1778_s13   ;;  %s1506_s12 = sphi %s1565_s12, %s1777_s12  }
   0x5   : > { %s28_s20 = sadd.s32 1, %s1522_s16  ;;  %s115_s21 = sadd.s32 1, %s1514_s14 }
   0x6   : > { %p30_p0 = scmp.ge.s32.totalorder %s28_s20, 2  ;;  %p125_p1 = scmp.ne.s32.totalorder %s1514_s14, %s1510_s13 }
   0x7   : > { %p126_p2 = scmp.eq.s32.totalorder %s1303_s18, 1  ;;  %p131_p3 = scmp.ne.s32.totalorder %s1510_s13, %s1506_s12 }
   0x8   : > { %s1783_s20 = smov (%p30_p0, %s28_s20), 0  ;;  %p132_p5 = scmp.eq.s32.totalorder %s1304_s19, 1 }
   0x9   : > { %p1605_p4 = por %p126_p2, %p125_p1  ;;  %s110_s23 = ssub.s32 %s1522_s16, %s1783_s20 }
   0xa   : > { %p1309_p6 = scmp.ge.s32.totalorder %s1526_s17, 1  ;;  %p113_p7 = scmp.eq.s32.totalorder %s110_s23, 0 }
   0xb   : > { %p1612_p8 = por %p132_p5, %p131_p3  ;;  %p172_p9 = scmp.lt.s32.totalorder %s1526_s17, 3 }
   0xc   : > { %s1618_s25 = scalar_select %p113_p7, %s1514_s14, %s115_s21  }
   0xd   : > { %p173_p10 = pnand %p1309_p6, %p172_p9 }
   0xe   : > { %p204_p11 = scmp.lt.s32.totalorder (!%p173_p10), %s1518_s15, 1  ;;  %v235_v0 = vlaneseq (!%p173_p10)  ;;  %vm217_vm0 = vcmask (!%p173_p10), 134144   ;;  %vm219_vm1 = vcmask (!%p173_p10), 273544   ;;  %v1528_v1 = vmov (!%p173_p10), 0.0   ;;  %s1529_s4 = smov (!%p173_p10), 17   ;;  %v1176_v57 = vld [vmem:[%s1773_s2] sm:$0xff] (!%p173_p10) }
   0xf   : > { %176 = sbr.rel (%p173_p10) target bundleno = 545 (0x221), region = 32  ;;  %218 = vst.msk [vmem:[#allocation2] sm:$0xf] (!%p173_p10), %vm217_vm0, %v1528_v1  ;;  %369 = vmatprep.mubr.f32.mxu1 (!%p173_p10), %v1528_v1  ;;  %756 = vmatprep.mubr.f32.mxu0 (!%p173_p10), %v1528_v1  ;;  %s1530_s5 = smov (!%p173_p10), 32   ;;  %vm230_vm6 = vcmask (!%p173_p10), 1043592   ;;  %vm231_vm7 = vcmask (!%p173_p10), 1047556  }
  0x10   : > { %220 = vst.msk [vmem:[#allocation2 + $0x8] sm:$0xf] (!%p173_p10), %vm219_vm1, %v1528_v1  ;;  %v236_v2 = vand.u32 (!%p173_p10), 127, %v235_v0  ;;  %s1531_s6 = smov (!%p173_p10), 18   ;;  %s1532_s7 = smov (!%p173_p10), 2   ;;  %vm226_vm8 = vcmask (!%p173_p10), 138240   ;;  %vm232_vm9 = vmor (!%p173_p10), %vm231_vm7, %vm230_vm6 }
  0x11   : > { %s1533_s8 = smov (!%p173_p10), 16   ;;  %s1534_s9 = smov (!%p173_p10), 34   ;;  %vm875_vm10 = vcmask (!%p173_p10), 261120   ;;  %vm770_vm11 = vcmask (!%p173_p10), 146432   ;;  %vm464_vm12 = vcmask (!%p173_p10), 15360   ;;  %vm569_vm13 = vcmask (!%p173_p10), 130048  }
  0x12   : > { %v237_v3 = vadd.s32 (!%p173_p10), 128, %v236_v2  ;;  %v242_v4 = vand.u32 (!%p173_p10), 15, %v236_v2  ;;  %s1535_s10 = smov (!%p173_p10), 111   ;;  %s1536_s11 = smov (!%p173_p10), 127   ;;  %vm1076_vm14 = vcmask (!%p173_p10), 277504   ;;  %v1541_v53 = vmov (!%p173_p10), 0  }
  0x13   : > { %s1537_s18 = smov (!%p173_p10), 96   ;;  %s1538_s19 = smov (!%p173_p10), 110   ;;  %1446 = vset.pattern.permute.xlu0 (!%p173_p10), %v1541_v53  ;;  %vm293_vm15 = vcmask (!%p173_p10), 1039360   ;;  %vm682_vm1 = vcmask (!%p173_p10), 908288   ;;  %vm481_vm6 = vcmask (!%p173_p10), 1031168   ;;  %vm586_vm7 = vcmask (!%p173_p10), 916480  }
  0x14   : > { %v249_v6 = vand.u32 (!%p173_p10), 15, %v237_v3  ;;  %vm262_vm2 = vcmp.ne.s32.totalorder (!%p173_p10), %v242_v4, 0  ;;  %vm268_vm3 = vcmp.ne.s32.totalorder (!%p173_p10), %v242_v4, 15  ;;  %s1539_s21 = smov (!%p173_p10), 126   ;;  %s1540_s23 = smov (!%p173_p10), 95  }
  0x15   : > { %v1313_v7 = vsel (!%p173_p10), %vm262_vm2, 1.0, %v1528_v1  ;;  %v1315_v8 = vsel (!%p173_p10), %vm268_vm3, 1.0, %v1528_v1  ;;  %vm296_vm2 = vcmask (!%p173_p10), 31744   ;;  %vm787_vm3 = vcmask (!%p173_p10), 900096  }
  0x16   : > { %s205_s26 = scalar_select %p204_p11, %s1518_s15, 1  ;;  %vm263_vm4 = vcmp.ne.s32.totalorder %v249_v6, 0  ;;  %vm269_vm5 = vcmp.ne.s32.totalorder %v249_v6, 15 }
  0x17   : > { %v1314_v9 = vsel %vm263_vm4, 1.0, %v1528_v1  ;;  %v1316_v10 = vsel %vm269_vm5, 1.0, %v1528_v1  ;;  %vm892_vm4 = vcmask 785408   ;;  %vm988_vm5 = vcmask 777216  }
  0x18   : > { %s1357_s27 = sshll.u32 %s205_s26, 3  ;;  %v1634_v11 = vcombine.low %v1313_v7, %v1314_v9  ;;  %v460_v12 = vcombine.low %v1315_v8, %v1316_v10  ;;  %s1542_s26 = smov 112   ;;  %v1317_v7 = vld [vmem:[%s1772_s1 + $0x8] sm:$0xff]  ;;  %v1332_v8 = vld [vmem:[%s1772_s1 + $0x20] sm:$0xff] }
  0x19   : > { %s208_s30 = scalar_lea.vmem %s1771_s0, %s1357_s27  ;;  %s1543_s27 = smov 94  }
  0x1a   : > { %v221_v5 = vld [vmem:[%s208_s30] sm:$0xff]  ;;  %872 = vrot.lane.b32.xlu1 %v1634_v11, %s1530_s5 }
  0x1b   : > { %223 = vrot.lane.b32.xlu0 %v221_v5, %s1529_s4  ;;  %s201_s4 = sand.u32 1, %s1510_s13  }
  0x1c   : > { %s1310_s5 = sshll.u32 %s201_s4, 4 }
  0x1e   : > { %461 = vrot.lane.b32.xlu1 %v460_v12, %s1532_s7  ;;  %s203_s7 = scalar_lea.vmem [#allocation3], %s1310_s5 }
  0x1f   : > { %767 = vrot.lane.b32.xlu0 %v460_v12, %s1531_s6  ;;  %s1358_s6 = sshll.u32 %s1518_s15, 8  ;;  %s1544_s15 = smov [#allocation3]  }
  0x22   : > { %1073 = vrot.lane.b32.xlu1 %v460_v12, %s1534_s9 }
  0x23   : > { %566 = vrot.lane.b32.xlu0 %v1634_v11, %s1533_s8  ;;  %s1203_s8 = sshll.u32 %s203_s7, 4  ;;  %s1726_s8 = int_to_ptr.vmem [resolvable:$true] %s1203_s8 }
  0x8c   : > { %v873_v18 = vpop.permute.xlu1 %872 }
  0x8d   : > { %v224_v13 = vpop.permute.xlu0 %223  ;;  %v874_v21 = vrot.slane %v873_v18, 4 }
  0x8e   : > { %v225_v14 = vrot.slane %v224_v13, 4 }
  0x8f   : > { %v876_v24 = vsel %vm875_vm10, %v874_v21, %v873_v18 }
  0x90   : > { %v227_v15 = vsel %vm226_vm8, %v225_v14, %v224_v13  ;;  %234 = vst.msk [vmem:[#allocation2 + $0x8] sm:$0xf] %vm217_vm0, %v225_v14  ;;  %v462_v30 = vpop.permute.xlu1 %461  ;;  %vm300_vm0 = vcmask 1043456   ;;  %v280_v14 = vld [vmem:[%s1772_s1] sm:$0xff]  ;;  %vm1093_vm8 = vcmask 769024  }
  0x91   : > { %233 = vst.msk [vmem:[#allocation2] sm:$0xff] %vm232_vm9, %v227_v15  ;;  %v768_v19 = vpop.permute.xlu0 %767  ;;  %v463_v32 = vrot.slane %v462_v30, 4 }
  0x92   : > { %v769_v22 = vrot.slane %v768_v19, 4 }
  0x93   : > { %v465_v39 = vsel %vm464_vm12, %v463_v32, %v462_v30 }
  0x94   : > { %v771_v25 = vsel %vm770_vm11, %v769_v22, %v768_v19  ;;  %v1074_v41 = vpop.permute.xlu1 %1073 }
  0x95   : > { %v567_v37 = vpop.permute.xlu0 %566  ;;  %v1075_v45 = vrot.slane %v1074_v41, 4 }
  0x96   : > { %v568_v40 = vrot.slane %v567_v37, 4 }
  0x97   : > { %v670_v16 = vld [vmem:[#allocation2 + $0x8] sm:$0xf]  ;;  %v1077_v49 = vsel %vm1076_vm14, %v1075_v45, %v1074_v41 }
  0x98   : > { %v281_v17 = vld [vmem:[#allocation2 + $0x8] sm:$0xf]  ;;  %680 = vrot.lane.b32.xlu1 %v670_v16, %s1535_s10  ;;  %v1639_v20 = vld [vmem:[#allocation2] sm:$0xff]  ;;  %v570_v44 = vsel %vm569_vm13, %v568_v40, %v567_v37 }
  0x99   : > { %291 = vrot.lane.b32.xlu0 %v281_v17, %s1536_s11  ;;  %v675_v23 = vcombine.high %v1639_v20, %v1639_v20  ;;  %v766_v26 = vld [vmem:[#allocation2 + $0x8] sm:$0xf]  ;;  %v879_v27 = vmul.f32 %v876_v24, %v1639_v20  ;;  %v774_v28 = vmul.f32 %v1639_v20, %v771_v25  ;;  %v468_v42 = vmul.f32 %v1639_v20, %v465_v39 }
  0x9a   : > { %v775_v29 = vmul.f32 %v769_v22, %v766_v26  ;;  %v871_v31 = vld [vmem:[#allocation2 + $0x8] sm:$0xf]  ;;  %v573_v47 = vmul.f32 %v1639_v20, %v570_v44  ;;  %v1080_v51 = vmul.f32 %v1077_v49, %v1639_v20  ;;  %v279_v62 = vmul.f32 %v1639_v20, %v1634_v11  ;;  %v1340_v26 = vld [vmem:[%s1772_s1 + $0x30] sm:$0xff]  ;;  %v1348_v44 = vld [vmem:[%s1772_s1 + $0x40] sm:$0xff] }
  0x9b   : > { %v780_v33 = vcombine.high %v774_v28, %v774_v28  ;;  %v880_v34 = vmul.f32 %v874_v21, %v871_v31  ;;  %v457_v35 = vld [vmem:[#allocation2 + $0x8] sm:$0xf]  ;;  %v885_v38 = vcombine.high %v879_v27, %v879_v27  ;;  %v474_v48 = vcombine.high %v468_v42, %v468_v42 }
  0x9c   : > { %287 = vrot.lane.b32.xlu1 %v1639_v20, %s1536_s11  ;;  %v469_v36 = vmul.f32 %v463_v32, %v457_v35  ;;  %v976_v43 = vld [vmem:[#allocation2 + $0x8] sm:$0xf]  ;;  %v579_v52 = vcombine.high %v573_v47, %v573_v47  ;;  %v1086_v56 = vcombine.high %v1080_v51, %v1080_v51  ;;  %v377_v4 = vcombine.high %v279_v62, %v279_v62  ;;  %v1324_v32 = vld [vmem:[%s1772_s1 + $0x10] sm:$0xff]  ;;  %v1344_v35 = vld [vmem:[%s1772_s1 + $0x38] sm:$0xff] }
  0x9d   : > { %676 = vrot.lane.b32.xlu0 %v1639_v20, %s1535_s10  ;;  %v565_v46 = vld [vmem:[#allocation2 + $0x8] sm:$0xf] }
  0x9e   : > { %v574_v50 = vmul.f32 %v568_v40, %v565_v46  ;;  %v1072_v54 = vld [vmem:[#allocation2 + $0x8] sm:$0xf] }
  0x9f   : > { %v1081_v55 = vmul.f32 %v1075_v45, %v1072_v54  ;;  %v1336_v17 = vld [vmem:[%s1772_s1 + $0x28] sm:$0xff] }
  0xa0   : > { %289 = vrot.lane.b32.xlu1 %v675_v23, %s1536_s11  ;;  %s1724_s11 = scalar_lea.hbm %s1774_s3, %s1358_s6 }
  0xa1   : > { %678 = vrot.lane.b32.xlu0 %v675_v23, %s1535_s10 }
  0xa4   : > { %886 = vrot.lane.b32.xlu1 %v879_v27, %s1537_s18 }
  0xa5   : > { %785 = vrot.lane.b32.xlu0 %v775_v29, %s1538_s19 }
  0xa8   : > { %783 = vrot.lane.b32.xlu1 %v780_v33, %s1538_s19 }
  0xa9   : > { %890 = vrot.lane.b32.xlu0 %v880_v34, %s1537_s18 }
  0xac   : > { %479 = vrot.lane.b32.xlu1 %v469_v36, %s1539_s21 }
  0xad   : > { %781 = vrot.lane.b32.xlu0 %v774_v28, %s1538_s19  ;;  %s1448_s19 = scalar_lea.vmem %s1726_s8, 256 }
  0xae   : > { %p1449_p12 = scmp.ne.s32.totalorder %s1726_s8, %s1448_s19 }
  0xb0   : > { %888 = vrot.lane.b32.xlu1 %v885_v38, %s1537_s18  ;;  %s1187_s18 = scalar_lea.sflag [#allocation4], %s201_s4  ;;  %p1450_p13 = pnand %p1449_p12, %p1605_p4 }
  0xb1   : > { %984 = vrot.lane.b32.xlu0 %v675_v23, %s1540_s23 }
  0xb2   : > { %p1451_p0 = pneg %p1450_p13 }
  0xb4   : > { %986 = vrot.lane.b32.xlu1 %v976_v43, %s1540_s23  ;;  %v1328_v43 = vld [vmem:[%s1772_s1 + $0x18] sm:$0xff] }
  0xb5   : > { %475 = vrot.lane.b32.xlu0 %v468_v42, %s1539_s21 }
  0xb8   : > { %982 = vrot.lane.b32.xlu1 %v1639_v20, %s1540_s23 }
  0xb9   : > { %477 = vrot.lane.b32.xlu0 %v474_v48, %s1539_s21  ;;  %s1452_s21 = sshll.u32 %s1544_s15, 4  ;;  %s1453_s21 = int_to_ptr.vmem [resolvable:$false] %s1452_s21 }
  0xba   : > { %s1454_s23 = scalar_lea.vmem %s1453_s21, 512  ;;  %p1455_p1 = scmp.lt.s32.totalorder %s1726_s8, %s1453_s21 }
  0xbb   : > { %p1456_p2 = scmp.lt.s32.totalorder %s1454_s23, %s1448_s19 }
  0xbc   : > { %584 = vrot.lane.b32.xlu1 %v574_v50, %s1542_s26 }
  0xbd   : > { %582 = vrot.lane.b32.xlu0 %v579_v52, %s1542_s26  ;;  %p1457_p3 = por %p1456_p2, %p1455_p1 }
  0xbf   : > { %p1458_p5 = pnand %p1457_p3, %p1451_p0 }
  0xc0   : > { %1091 = vrot.lane.b32.xlu1 %v1081_v55, %s1543_s27 }
  0xc1   : > { %1089 = vrot.lane.b32.xlu0 %v1086_v56, %s1543_s27 }
  0xc4   : > { %1087 = vrot.lane.b32.xlu1 %v1080_v51, %s1543_s27 }
  0xc5   : > { %580 = vrot.lane.b32.xlu0 %v573_v47, %s1542_s26 }
  0xc9   : > { %1179 = vperm.xlu0 %1446, %v1176_v57  }
 0x10a   : > { %v681_v58 = vpop.permute.xlu1 %680 }
 0x10b   : > { %v292_v59 = vpop.permute.xlu0 %291 }
 0x10e   : > { %v288_v60 = vpop.permute.xlu1 %287 }
 0x10f   : > { %v677_v61 = vpop.permute.xlu0 %676 }
 0x112   : > { %v290_v63 = vpop.permute.xlu1 %289 }
 0x113   : > { %v679_v0 = vpop.permute.xlu0 %678  ;;  %v295_v2 = vsel %vm293_vm15, %v290_v63, %v292_v59  ;;  %v294_v3 = vsel %vm293_vm15, %v288_v60, %v290_v63 }
 0x114   : > { %1318 = vmatprep.subr.msk.mxu1 %vm300_vm0, %v295_v2  ;;  %v684_v5 = vsel %vm682_vm1, %v679_v0, %v681_v58  ;;  %v683_v6 = vsel %vm682_vm1, %v677_v61, %v679_v0 }
 0x115   : > { %1333 = vmatprep.subr.msk.mxu0 %vm300_vm0, %v684_v5  ;;  %1319 = vmatpush1.msk.msra.mxu1 %vm300_vm0, %v294_v3 }
 0x116   : > { %1334 = vmatpush1.msk.msra.mxu0 %vm300_vm0, %v683_v6  ;;  %v887_v9 = vpop.permute.xlu1 %886  ;;  %1321 = vmatprep.subr.msk.mxu1 %vm300_vm0, %v377_v4 }
 0x117   : > { %v786_v10 = vpop.permute.xlu0 %785  ;;  %1320 = vmatmul.mubr.msk.f32.vlgmr.msra.gmra.mrb[0].mxu1 %vm296_vm2, %v1317_v7  ;;  %1335 = vmatmul.mubr.msk.f32.vlgmr.msra.gmra.mrb[0].mxu0 %vm296_vm2, %v1332_v8 }
 0x118   : > { %1322 = vmatpush1.msk.msra.mxu1 %vm300_vm0, %v279_v62  ;;  %861 = vmatprep.mubr.f32.mxu0 %v1528_v1 }
 0x119   : > { %449 = vmatprep.mubr.f32.mxu1 %v1528_v1 }
 0x11a   : > { %v784_v11 = vpop.permute.xlu1 %783 }
 0x11b   : > { %v789_v12 = vsel %vm787_vm3, %v784_v11, %v786_v10  ;;  %v891_v13 = vpop.permute.xlu0 %890 }
 0x11c   : > { %1337 = vmatprep.subr.msk.mxu0 %vm300_vm0, %v789_v12 }
 0x11e   : > { %v480_v15 = vpop.permute.xlu1 %479 }
 0x11f   : > { %v782_v16 = vpop.permute.xlu0 %781  ;;  %1323 = vmatmul.mubr.msk.f32.vlgmr.msra.gmra.mrb[0].mxu1 %vm296_vm2, %v280_v14 }
 0x120   : > { %v788_v18 = vsel %vm787_vm3, %v782_v16, %v784_v11  ;;  %555 = vmatprep.mubr.f32.mxu1 %v1528_v1 }
 0x121   : > { %1338 = vmatpush1.msk.msra.mxu0 %vm300_vm0, %v788_v18 }
 0x122   : > { %1339 = vmatmul.mubr.msk.f32.vlgmr.msra.gmra.mrb[0].mxu0 %vm296_vm2, %v1336_v17  ;;  %v889_v19 = vpop.permute.xlu1 %888 }
 0x123   : > { %v893_v20 = vsel %vm892_vm4, %v887_v9, %v889_v19  ;;  %v894_v21 = vsel %vm892_vm4, %v889_v19, %v891_v13  ;;  %v985_v22 = vpop.permute.xlu0 %984  ;;  %966 = vmatprep.mubr.f32.mxu0 %v1528_v1 }
 0x124   : > { %1341 = vmatprep.subr.msk.mxu0 %vm300_vm0, %v894_v21 }
 0x125   : > { %1342 = vmatpush1.msk.msra.mxu0 %vm300_vm0, %v893_v20 }
 0x126   : > { %v987_v23 = vpop.permute.xlu1 %986 }
 0x127   : > { %v990_v24 = vsel %vm988_vm5, %v985_v22, %v987_v23  ;;  %v476_v25 = vpop.permute.xlu0 %475 }
 0x128   : > { %1345 = vmatprep.subr.msk.mxu0 %vm300_vm0, %v990_v24 }
 0x12a   : > { %1343 = vmatmul.mubr.msk.f32.vlgmr.msra.gmra.mrb[0].mxu0 %vm296_vm2, %v1340_v26  ;;  %v983_v27 = vpop.permute.xlu1 %982 }
 0x12b   : > { %v989_v28 = vsel %vm988_vm5, %v983_v27, %v985_v22  ;;  %v478_v29 = vpop.permute.xlu0 %477  ;;  %1062 = vmatprep.mubr.f32.mxu0 %v1528_v1 }
 0x12c   : > { %v482_v30 = vsel %vm481_vm6, %v476_v25, %v478_v29  ;;  %v483_v31 = vsel %vm481_vm6, %v478_v29, %v480_v15  ;;  %1346 = vmatpush1.msk.msra.mxu0 %vm300_vm0, %v989_v28 }
 0x12d   : > { %1325 = vmatprep.subr.msk.mxu1 %vm300_vm0, %v483_v31 }
 0x12e   : > { %1326 = vmatpush1.msk.msra.mxu1 %vm300_vm0, %v482_v30  ;;  %v585_v33 = vpop.permute.xlu1 %584 }
 0x12f   : > { %v583_v34 = vpop.permute.xlu0 %582  ;;  %1327 = vmatmul.mubr.msk.f32.vlgmr.msra.gmra.mrb[0].mxu1 %vm296_vm2, %v1324_v32 }
 0x130   : > { %v588_v36 = vsel %vm586_vm7, %v583_v34, %v585_v33  ;;  %660 = vmatprep.mubr.f32.mxu1 %v1528_v1 }
 0x131   : > { %1329 = vmatprep.subr.msk.mxu1 %vm300_vm0, %v588_v36 }
 0x132   : > { %1347 = vmatmul.mubr.msk.f32.vlgmr.msra.gmra.mrb[0].mxu0 %vm296_vm2, %v1344_v35  ;;  %v1092_v37 = vpop.permute.xlu1 %1091 }
 0x133   : > { %v1090_v38 = vpop.permute.xlu0 %1089  ;;  %1167 = vmatprep.mubr.f32.mxu0 %v1528_v1 }
 0x134   : > { %v1095_v39 = vsel %vm1093_vm8, %v1090_v38, %v1092_v37 }
 0x135   : > { %1349 = vmatprep.subr.msk.mxu0 %vm300_vm0, %v1095_v39 }
 0x136   : > { %v1088_v40 = vpop.permute.xlu1 %1087 }
 0x137   : > { %v1094_v41 = vsel %vm1093_vm8, %v1088_v40, %v1090_v38  ;;  %v581_v42 = vpop.permute.xlu0 %580 }
 0x138   : > { %v587_v45 = vsel %vm586_vm7, %v581_v42, %v583_v34  ;;  %1350 = vmatpush1.msk.msra.mxu0 %vm300_vm0, %v1094_v41 }
 0x139   : > { %1330 = vmatpush1.msk.msra.mxu1 %vm300_vm0, %v587_v45 }
 0x13a   : > { %1331 = vmatmul.mubr.msk.f32.vlgmr.msra.gmra.mrb[0].mxu1 %vm296_vm2, %v1328_v43  ;;  %1351 = vmatmul.mubr.msk.f32.vlgmr.msra.gmra.mrb[0].mxu0 %vm296_vm2, %v1348_v44 }
 0x148   : > { %v1180_v1 = vpop.permute.xlu0 %1179 }
 0x20d   : > { %v662_v46 = vpop.f32.mrb[0].mxu1  ;;  %v1169_v47 = vpop.f32.mrb[0].mxu0 }
 0x20e   : > { %v1359_v48 = vadd.f32 %v1169_v47, %v662_v46  ;;  %v664_v49 = vpop.f32.mrb[1].mxu1  ;;  %v1171_v50 = vpop.f32.mrb[1].mxu0 }
 0x20f   : > { %v1360_v51 = vadd.f32 %v1171_v50, %v664_v49 }
 0x210   : > { %v1182_v52 = vadd.f32 %v1359_v48, %v1180_v1 }
 0x211   : > { %v1183_v53 = vadd.f32 %v1360_v51, %v1180_v1 }
 0x212   : > { %1184 = vst [vmem:[%s203_s7] sm:$0xff] %v1182_v52 }
 0x213   : > { %1185 = vst [vmem:[%s203_s7 + $0x8] sm:$0xff] %v1183_v53 }
 0x214   : > { %1461 = shalt.err (!%p1458_p5)
}
 0x215   : > { %s1462_s26 = scalar_lea.hbm %s1724_s11, 256  ;;  %s1466_s29 = scalar_lea.hbm %s1774_s3, 512 }
 0x216   : > { %p1463_p6 = scmp.ne.s32.totalorder %s1724_s11, %s1462_s26  ;;  %p1467_p10 = scmp.lt.u32.totalorder %s1724_s11, %s1774_s3 }
 0x217   : > { %p1468_p11 = scmp.lt.u32.totalorder %s1466_s29, %s1462_s26  ;;  %p1470_p13 = scmp.lt.u32.totalorder %s1462_s26, %s1724_s11 }
 0x218   : > { %p1464_p7 = pnand %p1463_p6, %p1605_p4 }
 0x219   : > { %p1469_p12 = por %p1468_p11, %p1467_p10 }
 0x21a   : > { %p1465_p9 = pneg %p1464_p7 }
 0x21b   : > { %p1471_p0 = por %p1470_p13, %p1469_p12 }
 0x21d   : > { %p1472_p1 = pnand %p1471_p0, %p1465_p9 }
 0x21f   : > { %1475 = shalt.err (!%p1472_p1)
}
 0x220   : > { %1375 = dma.vmem_to_hbm [thread:$0]  (%p1605_p4), %s1726_s8, 256, %s1724_s11, %s1187_s18  }
 0x221 PF: > { %p1381_p2 = scmp.ge.s32.totalorder %s1526_s17, 2  ;;  %s1215_s5 = sand.u32 1, %s1506_s12  }
 0x222   : > { %s1216_s6 = scalar_lea.sflag [#allocation4], %s1215_s5 }
 0x223   : > { %p1378_p3 = pnand %p1381_p2, %p1612_p8 }
 0x225   : > { %1501 = dma.done.wait (!%p1378_p3), %s1216_s6, 256  }
 0x226   : > { %1503 = vsyncadd (!%p1378_p3), %s1216_s6, 4294967040  ;;  %s16_s17 = sadd.s32 1, %s1526_s17   ;;  %s1777_s12 = smov %s1510_s13 }
 0x227   : > { %p13_p5 = scmp.ge.s32.totalorder %s16_s17, 4   ;;  %s1778_s13 = smov %s1514_s14 }
 0x228   : > { %s1779_s14 = smov %s1618_s25  ;;  %s1780_s15 = smov %s1522_s16 }
 0x229   : > { %s1781_s16 = smov %s1783_s20  ;;  %15 = sbr.rel (!%p13_p5) target bundleno = 4 (0x4), region = 81 }
 0x230   :  { %1221 = vsyncpa [#allocation4], 1 }
 0x231   :  { %1223 = vsyncpa [#allocation4 + $0x1], 1 }

</bundles_post_ra>
